<compile_context>
chip_gen: v5e
topology: v5e:2x2
jax: 0.10.0
libtpu: 0.0.40
codegen_flags: <defaults>
</compile_context>

<pallas_src>
import functools
import math

import jax
import jax.numpy as jnp
from jax.experimental import pallas as pl
from jax.experimental.pallas import tpu as pltpu


# --------------------------------------------------------------------------- #
# in-kernel helpers (traced inside the Pallas body)
# --------------------------------------------------------------------------- #
def _layer_norm(h, g, b, eps=1e-5):
    mu = jnp.mean(h, axis=-1, keepdims=True)
    xc = h - mu
    var = jnp.mean(xc * xc, axis=-1, keepdims=True)
    return xc * jax.lax.rsqrt(var + eps) * g + b


def _erf_approx(z):
    # Abramowitz & Stegun 7.1.26, max abs error 1.5e-7 — matches PyTorch's
    # exact-erf nn.GELU without relying on a lax.erf lowering rule in Mosaic.
    a1, a2, a3, a4, a5 = 0.254829592, -0.284496736, 1.421413741, -1.453152027, 1.061405429
    p = 0.3275911
    s = jnp.where(z >= 0.0, 1.0, -1.0)
    za = jnp.abs(z)
    t = 1.0 / (1.0 + p * za)
    poly = ((((a5 * t + a4) * t + a3) * t + a2) * t + a1) * t
    return s * (1.0 - poly * jnp.exp(-za * za))


def _gelu_exact(x):
    return 0.5 * x * (1.0 + _erf_approx(x * (1.0 / math.sqrt(2.0))))


# order of the packed (16, D) per-feature vectors
VEC_ORDER = [
    "bbp",                      # 0  before_proj bias
    "lnx_g", "lnx_b",           # 1, 2  LN on x (ca_block)
    "lnt_g", "lnt_b",           # 3, 4  LN on xf
    "bq", "bk", "bv",           # 5, 6, 7
    "aln_g", "aln_b",           # 8, 9  attn StylizationBlock LN
    "aout_b",                   # 10
    "fb2",                      # 11
    "fln_g", "fln_b",           # 12, 13 FFN StylizationBlock LN
    "fout_b",                   # 14
    "bap",                      # 15 after_proj bias
]


def make_kernel(block_index, num_heads, latent_dim):
    head_dim = latent_dim // num_heads
    inv_sqrt = 1.0 / math.sqrt(head_dim)

    def kernel(x_ref, c_ref, xf_ref, gate_ref,
               a_scale_ref, a_shift_ref, f_scale_ref, f_shift_ref,
               vecs_ref, fb1_ref,
               wbp_ref, wq_ref, wkv_ref, aout_ref, fw1_ref, fw2_ref, fout_ref, wap_ref,
               c_out_ref, cskip_ref):
        bblk, t, d = x_ref.shape
        n = xf_ref.shape[1]
        rows = bblk * t

        vecs = vecs_ref[...]                       # (16, D), f32
        bbp = vecs[0:1]
        lnx_g, lnx_b = vecs[1:2], vecs[2:3]
        lnt_g, lnt_b = vecs[3:4], vecs[4:5]
        bq, bk, bv = vecs[5:6], vecs[6:7], vecs[7:8]
        aln_g, aln_b = vecs[8:9], vecs[9:10]
        aout_b = vecs[10:11]
        fb2 = vecs[11:12]
        fln_g, fln_b = vecs[12:13], vecs[13:14]
        fout_b = vecs[14:15]
        bap = vecs[15:16]

        def mm(a, w_ref):
            # bf16 MXU inputs, f32 accumulation
            return jnp.dot(a.astype(jnp.bfloat16), w_ref[...],
                           preferred_element_type=jnp.float32)

        x = x_ref[...].reshape(rows, d)            # fold batch into rows
        c_in = c_ref[...].reshape(rows, d)
        xf = xf_ref[...].reshape(bblk * n, d)

        # ---- before_proj (only on block 0) + residual with x ----
        if block_index == 0:
            h = x + (mm(c_in, wbp_ref) + bbp)
        else:
            h = c_in

        # ---- copied_block.ca_block : text cross-attention ----
        hn = _layer_norm(h, lnx_g, lnx_b)          # (rows, D)
        xfn = _layer_norm(xf, lnt_g, lnt_b)        # (bblk*N, D)
        q = (mm(hn, wq_ref) + bq).reshape(bblk, t, d)
        kv = mm(xfn, wkv_ref)                      # fused K|V: (bblk*N, 2D)
        k = (kv[:, :d] + bk).reshape(bblk, n, d)
        v = (kv[:, d:] + bv).reshape(bblk, n, d)

        heads = []
        for hh in range(num_heads):
            lo, hi = hh * head_dim, (hh + 1) * head_dim
            qh = q[:, :, lo:hi].astype(jnp.bfloat16)
            kh = k[:, :, lo:hi].astype(jnp.bfloat16)
            vh = v[:, :, lo:hi].astype(jnp.bfloat16)
            logits = jnp.einsum("btd,bnd->btn", qh, kh,
                                preferred_element_type=jnp.float32) * inv_sqrt
            p = jax.nn.softmax(logits, axis=-1)
            heads.append(jnp.einsum("btn,bnd->btd", p.astype(jnp.bfloat16), vh,
                                    preferred_element_type=jnp.float32))
        attn = jnp.concatenate(heads, axis=-1)     # (bblk, T, D)
        # src_mask * text-cond gate (precomputed in the wrapper)
        attn = attn * gate_ref[...]

        def stylize(y3, scale, shift, ln_g, ln_b, out_w_ref, out_b):
            # StylizationBlock with the emb-conditioned (scale, shift) hoisted out.
            hln = _layer_norm(y3, ln_g, ln_b)                 # (bblk, T, D)
            hmod = hln * (1.0 + scale) + shift                # scale/shift: (bblk,1,D)
            return mm(jax.nn.silu(hmod).reshape(rows, d), out_w_ref) + out_b

        h1 = h + stylize(attn, a_scale_ref[...], a_shift_ref[...],
                         aln_g, aln_b, aout_ref, aout_b)

        # ---- copied_block.ffn ----
        y = mm(_gelu_exact(mm(h1, fw1_ref) + fb1_ref[...]), fw2_ref) + fb2
        h2 = h1 + stylize(y.reshape(bblk, t, d), f_scale_ref[...], f_shift_ref[...],
                          fln_g, fln_b, fout_ref, fout_b)

        # ---- outputs: c and c_skip = after_proj(c) ----
        c_out_ref[...] = h2.reshape(bblk, t, d)
        cskip_ref[...] = (mm(h2, wap_ref) + bap).reshape(bblk, t, d)

    return kernel


# --------------------------------------------------------------------------- #
# parameters (PyTorch-equivalent layout, f32)
# --------------------------------------------------------------------------- #
def init_params(key, D, E, F):
    ks = jax.random.split(key, 9)

    def w(k, shape, s=0.02):
        return jax.random.normal(k, shape, jnp.float32) * s

    z, o = jnp.zeros, jnp.ones
    return dict(
        # before_proj: init.zeros_ (as in the PyTorch __init__)
        wbp=z((D, D), jnp.float32), bbp=z((1, D), jnp.float32),
        lnx_g=o((1, D), jnp.float32), lnx_b=z((1, D), jnp.float32),
        lnt_g=o((1, D), jnp.float32), lnt_b=z((1, D), jnp.float32),
        wq=w(ks[0], (D, D)), bq=z((1, D), jnp.float32),
        wk=w(ks[1], (D, D)), bk=z((1, D), jnp.float32),
        wv=w(ks[2], (D, D)), bv=z((1, D), jnp.float32),
        aem_w=w(ks[3], (E, 2 * D)), aem_b=z((1, 2 * D), jnp.float32),
        aln_g=o((1, D), jnp.float32), aln_b=z((1, D), jnp.float32),
        aout_w=w(ks[4], (D, D)), aout_b=z((1, D), jnp.float32),
        fw1=w(ks[5], (D, F)), fb1=z((1, F), jnp.float32),
        fw2=w(ks[6], (F, D)), fb2=z((1, D), jnp.float32),
        fem_w=w(ks[7], (E, 2 * D)), fem_b=z((1, 2 * D), jnp.float32),
        fln_g=o((1, D), jnp.float32), fln_b=z((1, D), jnp.float32),
        fout_w=w(ks[8], (D, D)), fout_b=z((1, D), jnp.float32),
        # after_proj: init.zeros_
        wap=z((D, D), jnp.float32), bap=z((1, D), jnp.float32),
    )


# --------------------------------------------------------------------------- #
# wrapper
# --------------------------------------------------------------------------- #
def control_t2m_block(x, c, xf, emb, src_mask, cond_type, params,
                      *, block_index=0, num_heads=4, b_block=None,
                      vmem_limit_bytes=None):
    B, T, D = x.shape
    F = params["fw1"].shape[1]
    f32, bf16 = jnp.float32, jnp.bfloat16

    if b_block is None:
        b_block = B
    assert B % b_block == 0, "batch must be divisible by b_block"
    grid = (B // b_block,)

    # ---- hoisted StylizationBlock emb matvecs (M=1 matmuls, big weights) ----
    e = jax.nn.silu(emb.astype(f32))                           # (B, E)
    a_ss = e @ params["aem_w"] + params["aem_b"]               # (B, 2D)
    f_ss = e @ params["fem_w"] + params["fem_b"]
    a_scale = a_ss[:, :D].reshape(B, 1, D)
    a_shift = a_ss[:, D:].reshape(B, 1, D)
    f_scale = f_ss[:, :D].reshape(B, 1, D)
    f_shift = f_ss[:, D:].reshape(B, 1, D)

    # ---- cond_type gate folded into src_mask ----
    text_cond = ((cond_type.reshape(B).astype(jnp.int32) % 10) > 0).astype(f32)
    gate = src_mask.astype(f32) * text_cond.reshape(B, 1, 1)   # (B, T, 1)

    # ---- pack the 16 per-feature (1, D) vectors into one block ----
    vecs = jnp.concatenate([params[n].reshape(1, D) for n in VEC_ORDER], axis=0)
    fb1 = params["fb1"].reshape(1, F).astype(f32)

    # ---- weight matrices (bf16 MXU inputs; K|V fused) ----
    wkv = jnp.concatenate([params["wk"], params["wv"]], axis=1)        # (D, 2D)
    weights = [params["wbp"], params["wq"], wkv, params["aout_w"],
               params["fw1"], params["fw2"], params["fout_w"], params["wap"]]
    weights = [w.astype(bf16) for w in weights]

    def bspec(shape):
        nd = len(shape)
        return pl.BlockSpec((b_block,) + tuple(shape[1:]),
                            lambda b, _nd=nd: (b,) + (0,) * (_nd - 1))

    def wspec(shape):
        nd = len(shape)
        return pl.BlockSpec(tuple(shape), lambda b, _nd=nd: (0,) * _nd)

    batched = [x.astype(f32), c.astype(f32), xf.astype(f32), gate,
               a_scale, a_shift, f_scale, f_shift]
    shared = [vecs.astype(f32), fb1] + weights

    in_specs = [bspec(a.shape) for a in batched] + [wspec(a.shape) for a in shared]
    # NOTE: at production D (512) the output lane dim is already a multiple of 128.
    out_specs = [bspec((B, T, D)), bspec((B, T, D))]
    out_shape = (jax.ShapeDtypeStruct((B, T, D), f32),
                 jax.ShapeDtypeStruct((B, T, D), f32))

    kernel = make_kernel(block_index, num_heads, D)
    c_out, c_skip = pl.pallas_call(
        kernel,
        out_shape=out_shape,
        grid=grid,
        in_specs=in_specs,
        out_specs=out_specs,
        compiler_params=pltpu.CompilerParams(
            dimension_semantics=("parallel",),      # batch axis shards over v7x cores
            vmem_limit_bytes=vmem_limit_bytes),     # raise for D=512/F=2048 weights
    )(*batched, *shared)
    return c_out, c_skip


# --------------------------------------------------------------------------- #
# pure-JAX reference (f32, exact-erf GELU) for a sanity check
# --------------------------------------------------------------------------- #
def reference_forward(x, c, xf, emb, src_mask, cond_type, params,
                      *, block_index=0, num_heads=4):
    B, T, D = x.shape
    hd = D // num_heads

    def ln(h, g, b, eps=1e-5):
        mu = h.mean(-1, keepdims=True)
        var = ((h - mu) ** 2).mean(-1, keepdims=True)
        return (h - mu) / jnp.sqrt(var + eps) * g + b

    def styl(y, ew, eb, g, b, ow, ob):
        ev = jax.nn.silu(emb) @ ew + eb
        scale, shift = ev[:, None, :D], ev[:, None, D:]
        hh = ln(y, g, b) * (1.0 + scale) + shift
        return jax.nn.silu(hh) @ ow + ob

    if block_index == 0:
        h = x + (c @ params["wbp"] + params["bbp"])
    else:
        h = c
    hn = ln(h, params["lnx_g"], params["lnx_b"])
    xfn = ln(xf, params["lnt_g"], params["lnt_b"])
    q = (hn @ params["wq"] + params["bq"]).reshape(B, T, num_heads, hd)
    k = (xfn @ params["wk"] + params["bk"]).reshape(B, -1, num_heads, hd)
    v = (xfn @ params["wv"] + params["bv"]).reshape(B, -1, num_heads, hd)
    logits = jnp.einsum("bthd,bnhd->bhtn", q, k) / math.sqrt(hd)
    p = jax.nn.softmax(logits, axis=-1)
    attn = jnp.einsum("bhtn,bnhd->bthd", p, v).reshape(B, T, D)
    text_cond = ((cond_type.reshape(B, 1, 1) % 10) > 0).astype(jnp.float32)
    attn = attn * text_cond * src_mask
    h1 = h + styl(attn, params["aem_w"], params["aem_b"], params["aln_g"],
                  params["aln_b"], params["aout_w"], params["aout_b"])
    y = jax.nn.gelu(h1 @ params["fw1"] + params["fb1"], approximate=False)
    y = y @ params["fw2"] + params["fb2"]
    h2 = h1 + styl(y, params["fem_w"], params["fem_b"], params["fln_g"],
                   params["fln_b"], params["fout_w"], params["fout_b"])
    return h2, h2 @ params["wap"] + params["bap"]


if __name__ == "__main__":
    B, T, N, D, E, F, H = 4, 8, 4, 32, 128, 64, 4

    key = jax.random.PRNGKey(0)
    k1, k2, k3, k4, kp = jax.random.split(key, 5)
    x = jax.random.normal(k1, (B, T, D), jnp.float32)
    c = jax.random.normal(k2, (B, T, D), jnp.float32)
    xf = jax.random.normal(k3, (B, N, D), jnp.float32)
    emb = jax.random.normal(k4, (B, E), jnp.float32)
    src_mask = jnp.ones((B, T, 1), jnp.float32).at[1, 6:, 0].set(0.0)
    # text conditioning on for batches 0,1,3; off (cond % 10 == 0) for batch 2
    cond_type = jnp.array([[1], [99], [10], [3]], jnp.int32)
    # motion_length / num_intervals are accepted by the PyTorch forward but only
    # used by the retrieval branch -- see TODO(synk) at the top of this file.

    params = init_params(kp, D, E, F)

    fn = jax.jit(functools.partial(control_t2m_block,
                                   block_index=0, num_heads=H, b_block=2))
    c_out, c_skip = fn(x, c, xf, emb, src_mask, cond_type, params)
    jax.block_until_ready((c_out, c_skip))

    assert c_out.shape == (B, T, D) and c_skip.shape == (B, T, D)
    assert bool(jnp.all(jnp.isfinite(c_out))) and bool(jnp.all(jnp.isfinite(c_skip)))

    ref_c, ref_skip = reference_forward(x, c, xf, emb, src_mask, cond_type, params,
                                        block_index=0, num_heads=H)
    assert bool(jnp.allclose(c_out, ref_c, atol=5e-2, rtol=5e-2))
    assert bool(jnp.allclose(c_skip, ref_skip, atol=5e-2, rtol=5e-2))

    print("KERNEL_OK")
</pallas_src>

<mosaic_0001>
module attributes {stable_mosaic.version = 11 : i64} {
  func.func @kernel(%arg0: i32, %arg1: memref<2x8x32xf32, #tpu.memory_space<vmem>>, %arg2: memref<2x8x32xf32, #tpu.memory_space<vmem>>, %arg3: memref<2x4x32xf32, #tpu.memory_space<vmem>>, %arg4: memref<2x8x1xf32, #tpu.memory_space<vmem>>, %arg5: memref<2x1x32xf32, #tpu.memory_space<vmem>>, %arg6: memref<2x1x32xf32, #tpu.memory_space<vmem>>, %arg7: memref<2x1x32xf32, #tpu.memory_space<vmem>>, %arg8: memref<2x1x32xf32, #tpu.memory_space<vmem>>, %arg9: memref<16x32xf32, #tpu.memory_space<vmem>>, %arg10: memref<1x64xf32, #tpu.memory_space<vmem>>, %arg11: memref<32x32xbf16, #tpu.memory_space<vmem>>, %arg12: memref<32x32xbf16, #tpu.memory_space<vmem>>, %arg13: memref<32x64xbf16, #tpu.memory_space<vmem>>, %arg14: memref<32x32xbf16, #tpu.memory_space<vmem>>, %arg15: memref<32x64xbf16, #tpu.memory_space<vmem>>, %arg16: memref<64x32xbf16, #tpu.memory_space<vmem>>, %arg17: memref<32x32xbf16, #tpu.memory_space<vmem>>, %arg18: memref<32x32xbf16, #tpu.memory_space<vmem>>, %arg19: memref<2x8x32xf32, #tpu.memory_space<vmem>>, %arg20: memref<2x8x32xf32, #tpu.memory_space<vmem>>) attributes {dimension_semantics = [#tpu.dimension_semantics<parallel>], iteration_bounds = array<i64: 2>, scalar_prefetch = 0 : i64, scratch_operands = 0 : i64, tpu.core_type = #tpu.core_type<tc>, window_params = [{transform_indices = @transform_0, window_bounds = array<i64: 2, 8, 32>}, {transform_indices = @transform_1, window_bounds = array<i64: 2, 8, 32>}, {transform_indices = @transform_2, window_bounds = array<i64: 2, 4, 32>}, {transform_indices = @transform_3, window_bounds = array<i64: 2, 8, 1>}, {transform_indices = @transform_4, window_bounds = array<i64: 2, 1, 32>}, {transform_indices = @transform_5, window_bounds = array<i64: 2, 1, 32>}, {transform_indices = @transform_6, window_bounds = array<i64: 2, 1, 32>}, {transform_indices = @transform_7, window_bounds = array<i64: 2, 1, 32>}, {pipeline_mode = #tpu.pipeline_mode<synchronous>, transform_indices = @transform_8, window_bounds = array<i64: 16, 32>}, {pipeline_mode = #tpu.pipeline_mode<synchronous>, transform_indices = @transform_9, window_bounds = array<i64: 1, 64>}, {pipeline_mode = #tpu.pipeline_mode<synchronous>, transform_indices = @transform_10, window_bounds = array<i64: 32, 32>}, {pipeline_mode = #tpu.pipeline_mode<synchronous>, transform_indices = @transform_11, window_bounds = array<i64: 32, 32>}, {pipeline_mode = #tpu.pipeline_mode<synchronous>, transform_indices = @transform_12, window_bounds = array<i64: 32, 64>}, {pipeline_mode = #tpu.pipeline_mode<synchronous>, transform_indices = @transform_13, window_bounds = array<i64: 32, 32>}, {pipeline_mode = #tpu.pipeline_mode<synchronous>, transform_indices = @transform_14, window_bounds = array<i64: 32, 64>}, {pipeline_mode = #tpu.pipeline_mode<synchronous>, transform_indices = @transform_15, window_bounds = array<i64: 64, 32>}, {pipeline_mode = #tpu.pipeline_mode<synchronous>, transform_indices = @transform_16, window_bounds = array<i64: 32, 32>}, {pipeline_mode = #tpu.pipeline_mode<synchronous>, transform_indices = @transform_17, window_bounds = array<i64: 32, 32>}, {transform_indices = @transform_18, window_bounds = array<i64: 2, 8, 32>}, {transform_indices = @transform_19, window_bounds = array<i64: 2, 8, 32>}]} {
    %c0 = arith.constant 0 : index
    %c0_0 = arith.constant 0 : index
    %0 = vector.load %arg9[%c0, %c0_0] : memref<16x32xf32, #tpu.memory_space<vmem>>, vector<16x32xf32>
    %1 = vector.extract_strided_slice %0 {offsets = [0, 0], sizes = [1, 32], strides = [1, 1]} : vector<16x32xf32> to vector<1x32xf32>
    %2 = vector.extract_strided_slice %0 {offsets = [1, 0], sizes = [1, 32], strides = [1, 1]} : vector<16x32xf32> to vector<1x32xf32>
    %3 = vector.extract_strided_slice %0 {offsets = [2, 0], sizes = [1, 32], strides = [1, 1]} : vector<16x32xf32> to vector<1x32xf32>
    %4 = vector.extract_strided_slice %0 {offsets = [3, 0], sizes = [1, 32], strides = [1, 1]} : vector<16x32xf32> to vector<1x32xf32>
    %5 = vector.extract_strided_slice %0 {offsets = [4, 0], sizes = [1, 32], strides = [1, 1]} : vector<16x32xf32> to vector<1x32xf32>
    %6 = vector.extract_strided_slice %0 {offsets = [5, 0], sizes = [1, 32], strides = [1, 1]} : vector<16x32xf32> to vector<1x32xf32>
    %7 = vector.extract_strided_slice %0 {offsets = [6, 0], sizes = [1, 32], strides = [1, 1]} : vector<16x32xf32> to vector<1x32xf32>
    %8 = vector.extract_strided_slice %0 {offsets = [7, 0], sizes = [1, 32], strides = [1, 1]} : vector<16x32xf32> to vector<1x32xf32>
    %9 = vector.extract_strided_slice %0 {offsets = [8, 0], sizes = [1, 32], strides = [1, 1]} : vector<16x32xf32> to vector<1x32xf32>
    %10 = vector.extract_strided_slice %0 {offsets = [9, 0], sizes = [1, 32], strides = [1, 1]} : vector<16x32xf32> to vector<1x32xf32>
    %11 = vector.extract_strided_slice %0 {offsets = [10, 0], sizes = [1, 32], strides = [1, 1]} : vector<16x32xf32> to vector<1x32xf32>
    %12 = vector.extract_strided_slice %0 {offsets = [11, 0], sizes = [1, 32], strides = [1, 1]} : vector<16x32xf32> to vector<1x32xf32>
    %13 = vector.extract_strided_slice %0 {offsets = [12, 0], sizes = [1, 32], strides = [1, 1]} : vector<16x32xf32> to vector<1x32xf32>
    %14 = vector.extract_strided_slice %0 {offsets = [13, 0], sizes = [1, 32], strides = [1, 1]} : vector<16x32xf32> to vector<1x32xf32>
    %15 = vector.extract_strided_slice %0 {offsets = [14, 0], sizes = [1, 32], strides = [1, 1]} : vector<16x32xf32> to vector<1x32xf32>
    %16 = vector.extract_strided_slice %0 {offsets = [15, 0], sizes = [1, 32], strides = [1, 1]} : vector<16x32xf32> to vector<1x32xf32>
    %c0_1 = arith.constant 0 : index
    %c0_2 = arith.constant 0 : index
    %c0_3 = arith.constant 0 : index
    %17 = vector.load %arg1[%c0_1, %c0_2, %c0_3] : memref<2x8x32xf32, #tpu.memory_space<vmem>>, vector<2x8x32xf32>
    %18 = vector.shape_cast %17 : vector<2x8x32xf32> to vector<16x32xf32>
    %c0_4 = arith.constant 0 : index
    %c0_5 = arith.constant 0 : index
    %c0_6 = arith.constant 0 : index
    %19 = vector.load %arg2[%c0_4, %c0_5, %c0_6] : memref<2x8x32xf32, #tpu.memory_space<vmem>>, vector<2x8x32xf32>
    %20 = vector.shape_cast %19 : vector<2x8x32xf32> to vector<16x32xf32>
    %c0_7 = arith.constant 0 : index
    %c0_8 = arith.constant 0 : index
    %c0_9 = arith.constant 0 : index
    %21 = vector.load %arg3[%c0_7, %c0_8, %c0_9] : memref<2x4x32xf32, #tpu.memory_space<vmem>>, vector<2x4x32xf32>
    %22 = vector.shape_cast %21 : vector<2x4x32xf32> to vector<8x32xf32>
    %23 = arith.truncf %20 : vector<16x32xf32> to vector<16x32xbf16>
    %c0_10 = arith.constant 0 : index
    %c0_11 = arith.constant 0 : index
    %24 = vector.load %arg11[%c0_10, %c0_11] : memref<32x32xbf16, #tpu.memory_space<vmem>>, vector<32x32xbf16>
    %cst = arith.constant dense<0.000000e+00> : vector<16x32xf32>
    %25 = tpu.matmul %23, %24, %cst {dimension_numbers = #tpu.dot_dimension_numbers<[1], [0], [0], [1], [0, 0, 1, 1], [], []>} : vector<16x32xbf16>, vector<32x32xbf16>, vector<16x32xf32> -> vector<16x32xf32>
    %26 = vector.broadcast %1 : vector<1x32xf32> to vector<16x32xf32>
    %27 = arith.addf %25, %26 : vector<16x32xf32>
    %28 = arith.addf %18, %27 : vector<16x32xf32>
    %cst_12 = arith.constant dense<0.000000e+00> : vector<16xf32>
    %29 = vector.multi_reduction <add>, %28, %cst_12 [1] : vector<16x32xf32> to vector<16xf32>
    %30 = vector.shape_cast %29 : vector<16xf32> to vector<16x1xf32>
    %cst_13 = arith.constant 3.200000e+01 : f32
    %31 = vector.broadcast %cst_13 : f32 to vector<16x1xf32>
    %32 = arith.divf %30, %31 : vector<16x1xf32>
    %33 = vector.broadcast %32 : vector<16x1xf32> to vector<16x32xf32>
    %34 = arith.subf %28, %33 : vector<16x32xf32>
    %35 = arith.mulf %34, %34 : vector<16x32xf32>
    %cst_14 = arith.constant dense<0.000000e+00> : vector<16xf32>
    %36 = vector.multi_reduction <add>, %35, %cst_14 [1] : vector<16x32xf32> to vector<16xf32>
    %37 = vector.shape_cast %36 : vector<16xf32> to vector<16x1xf32>
    %cst_15 = arith.constant 3.200000e+01 : f32
    %38 = vector.broadcast %cst_15 : f32 to vector<16x1xf32>
    %39 = arith.divf %37, %38 : vector<16x1xf32>
    %cst_16 = arith.constant 9.99999974E-6 : f32
    %40 = vector.broadcast %cst_16 : f32 to vector<16x1xf32>
    %41 = arith.addf %39, %40 : vector<16x1xf32>
    %42 = math.rsqrt %41 : vector<16x1xf32>
    %43 = vector.broadcast %42 : vector<16x1xf32> to vector<16x32xf32>
    %44 = arith.mulf %34, %43 : vector<16x32xf32>
    %45 = vector.broadcast %2 : vector<1x32xf32> to vector<16x32xf32>
    %46 = arith.mulf %44, %45 : vector<16x32xf32>
    %47 = vector.broadcast %3 : vector<1x32xf32> to vector<16x32xf32>
    %48 = arith.addf %46, %47 : vector<16x32xf32>
    %cst_17 = arith.constant dense<0.000000e+00> : vector<8xf32>
    %49 = vector.multi_reduction <add>, %22, %cst_17 [1] : vector<8x32xf32> to vector<8xf32>
    %50 = vector.shape_cast %49 : vector<8xf32> to vector<8x1xf32>
    %cst_18 = arith.constant 3.200000e+01 : f32
    %51 = vector.broadcast %cst_18 : f32 to vector<8x1xf32>
    %52 = arith.divf %50, %51 : vector<8x1xf32>
    %53 = vector.broadcast %52 : vector<8x1xf32> to vector<8x32xf32>
    %54 = arith.subf %22, %53 : vector<8x32xf32>
    %55 = arith.mulf %54, %54 : vector<8x32xf32>
    %cst_19 = arith.constant dense<0.000000e+00> : vector<8xf32>
    %56 = vector.multi_reduction <add>, %55, %cst_19 [1] : vector<8x32xf32> to vector<8xf32>
    %57 = vector.shape_cast %56 : vector<8xf32> to vector<8x1xf32>
    %cst_20 = arith.constant 3.200000e+01 : f32
    %58 = vector.broadcast %cst_20 : f32 to vector<8x1xf32>
    %59 = arith.divf %57, %58 : vector<8x1xf32>
    %cst_21 = arith.constant 9.99999974E-6 : f32
    %60 = vector.broadcast %cst_21 : f32 to vector<8x1xf32>
    %61 = arith.addf %59, %60 : vector<8x1xf32>
    %62 = math.rsqrt %61 : vector<8x1xf32>
    %63 = vector.broadcast %62 : vector<8x1xf32> to vector<8x32xf32>
    %64 = arith.mulf %54, %63 : vector<8x32xf32>
    %65 = vector.broadcast %4 : vector<1x32xf32> to vector<8x32xf32>
    %66 = arith.mulf %64, %65 : vector<8x32xf32>
    %67 = vector.broadcast %5 : vector<1x32xf32> to vector<8x32xf32>
    %68 = arith.addf %66, %67 : vector<8x32xf32>
    %69 = arith.truncf %48 : vector<16x32xf32> to vector<16x32xbf16>
    %c0_22 = arith.constant 0 : index
    %c0_23 = arith.constant 0 : index
    %70 = vector.load %arg12[%c0_22, %c0_23] : memref<32x32xbf16, #tpu.memory_space<vmem>>, vector<32x32xbf16>
    %cst_24 = arith.constant dense<0.000000e+00> : vector<16x32xf32>
    %71 = tpu.matmul %69, %70, %cst_24 {dimension_numbers = #tpu.dot_dimension_numbers<[1], [0], [0], [1], [0, 0, 1, 1], [], []>} : vector<16x32xbf16>, vector<32x32xbf16>, vector<16x32xf32> -> vector<16x32xf32>
    %72 = vector.broadcast %6 : vector<1x32xf32> to vector<16x32xf32>
    %73 = arith.addf %71, %72 : vector<16x32xf32>
    %74 = vector.shape_cast %73 : vector<16x32xf32> to vector<2x8x32xf32>
    %75 = arith.truncf %68 : vector<8x32xf32> to vector<8x32xbf16>
    %c0_25 = arith.constant 0 : index
    %c0_26 = arith.constant 0 : index
    %76 = vector.load %arg13[%c0_25, %c0_26] : memref<32x64xbf16, #tpu.memory_space<vmem>>, vector<32x64xbf16>
    %cst_27 = arith.constant dense<0.000000e+00> : vector<8x64xf32>
    %77 = tpu.matmul %75, %76, %cst_27 {dimension_numbers = #tpu.dot_dimension_numbers<[1], [0], [0], [1], [0, 0, 1, 1], [], []>} : vector<8x32xbf16>, vector<32x64xbf16>, vector<8x64xf32> -> vector<8x64xf32>
    %78 = vector.extract_strided_slice %77 {offsets = [0, 0], sizes = [8, 32], strides = [1, 1]} : vector<8x64xf32> to vector<8x32xf32>
    %79 = vector.broadcast %7 : vector<1x32xf32> to vector<8x32xf32>
    %80 = arith.addf %78, %79 : vector<8x32xf32>
    %81 = vector.shape_cast %80 : vector<8x32xf32> to vector<2x4x32xf32>
    %82 = vector.extract_strided_slice %77 {offsets = [0, 32], sizes = [8, 32], strides = [1, 1]} : vector<8x64xf32> to vector<8x32xf32>
    %83 = vector.broadcast %8 : vector<1x32xf32> to vector<8x32xf32>
    %84 = arith.addf %82, %83 : vector<8x32xf32>
    %85 = vector.shape_cast %84 : vector<8x32xf32> to vector<2x4x32xf32>
    %86 = vector.extract_strided_slice %74 {offsets = [0, 0, 0], sizes = [2, 8, 8], strides = [1, 1, 1]} : vector<2x8x32xf32> to vector<2x8x8xf32>
    %87 = arith.truncf %86 : vector<2x8x8xf32> to vector<2x8x8xbf16>
    %88 = vector.extract_strided_slice %81 {offsets = [0, 0, 0], sizes = [2, 4, 8], strides = [1, 1, 1]} : vector<2x4x32xf32> to vector<2x4x8xf32>
    %89 = arith.truncf %88 : vector<2x4x8xf32> to vector<2x4x8xbf16>
    %90 = vector.extract_strided_slice %85 {offsets = [0, 0, 0], sizes = [2, 4, 8], strides = [1, 1, 1]} : vector<2x4x32xf32> to vector<2x4x8xf32>
    %91 = arith.truncf %90 : vector<2x4x8xf32> to vector<2x4x8xbf16>
    "tpu.trace_start"() <{level = 10 : i32, message = "btd,bnd->btn"}> : () -> ()
    %cst_28 = arith.constant dense<0.000000e+00> : vector<2x8x4xf32>
    %92 = tpu.matmul %87, %89, %cst_28 {dimension_numbers = #tpu.dot_dimension_numbers<[2], [2], [1], [1], [0, 0, 0, 1, 1, 1], [0], [0]>} : vector<2x8x8xbf16>, vector<2x4x8xbf16>, vector<2x8x4xf32> -> vector<2x8x4xf32>
    "tpu.trace_stop"() : () -> ()
    %cst_29 = arith.constant 0.353553385 : f32
    %93 = vector.broadcast %cst_29 : f32 to vector<2x8x4xf32>
    %94 = arith.mulf %92, %93 : vector<2x8x4xf32>
    %cst_30 = arith.constant dense<0xFF800000> : vector<2x8xf32>
    %95 = vector.multi_reduction <maximumf>, %94, %cst_30 [2] : vector<2x8x4xf32> to vector<2x8xf32>
    %cst_31 = arith.constant 0xFF800000 : f32
    %96 = vector.broadcast %cst_31 : f32 to vector<2x8xf32>
    %97 = arith.maximumf %96, %95 : vector<2x8xf32>
    %98 = vector.shape_cast %97 : vector<2x8xf32> to vector<2x8x1xf32>
    %99 = vector.broadcast %98 : vector<2x8x1xf32> to vector<2x8x4xf32>
    %100 = arith.subf %94, %99 : vector<2x8x4xf32>
    %101 = math.exp %100 : vector<2x8x4xf32>
    %cst_32 = arith.constant dense<0.000000e+00> : vector<2x8xf32>
    %102 = vector.multi_reduction <add>, %101, %cst_32 [2] : vector<2x8x4xf32> to vector<2x8xf32>
    %103 = vector.shape_cast %102 : vector<2x8xf32> to vector<2x8x1xf32>
    %104 = vector.broadcast %103 : vector<2x8x1xf32> to vector<2x8x4xf32>
    %105 = arith.divf %101, %104 : vector<2x8x4xf32>
    %106 = arith.truncf %105 : vector<2x8x4xf32> to vector<2x8x4xbf16>
    "tpu.trace_start"() <{level = 10 : i32, message = "btn,bnd->btd"}> : () -> ()
    %cst_33 = arith.constant dense<0.000000e+00> : vector<2x8x8xf32>
    %107 = tpu.matmul %106, %91, %cst_33 {dimension_numbers = #tpu.dot_dimension_numbers<[2], [1], [1], [2], [0, 0, 0, 1, 1, 2], [0], [0]>} : vector<2x8x4xbf16>, vector<2x4x8xbf16>, vector<2x8x8xf32> -> vector<2x8x8xf32>
    "tpu.trace_stop"() : () -> ()
    %108 = vector.extract_strided_slice %74 {offsets = [0, 0, 8], sizes = [2, 8, 8], strides = [1, 1, 1]} : vector<2x8x32xf32> to vector<2x8x8xf32>
    %109 = arith.truncf %108 : vector<2x8x8xf32> to vector<2x8x8xbf16>
    %110 = vector.extract_strided_slice %81 {offsets = [0, 0, 8], sizes = [2, 4, 8], strides = [1, 1, 1]} : vector<2x4x32xf32> to vector<2x4x8xf32>
    %111 = arith.truncf %110 : vector<2x4x8xf32> to vector<2x4x8xbf16>
    %112 = vector.extract_strided_slice %85 {offsets = [0, 0, 8], sizes = [2, 4, 8], strides = [1, 1, 1]} : vector<2x4x32xf32> to vector<2x4x8xf32>
    %113 = arith.truncf %112 : vector<2x4x8xf32> to vector<2x4x8xbf16>
    "tpu.trace_start"() <{level = 10 : i32, message = "btd,bnd->btn"}> : () -> ()
    %cst_34 = arith.constant dense<0.000000e+00> : vector<2x8x4xf32>
    %114 = tpu.matmul %109, %111, %cst_34 {dimension_numbers = #tpu.dot_dimension_numbers<[2], [2], [1], [1], [0, 0, 0, 1, 1, 1], [0], [0]>} : vector<2x8x8xbf16>, vector<2x4x8xbf16>, vector<2x8x4xf32> -> vector<2x8x4xf32>
    "tpu.trace_stop"() : () -> ()
    %cst_35 = arith.constant 0.353553385 : f32
    %115 = vector.broadcast %cst_35 : f32 to vector<2x8x4xf32>
    %116 = arith.mulf %114, %115 : vector<2x8x4xf32>
    %cst_36 = arith.constant dense<0xFF800000> : vector<2x8xf32>
    %117 = vector.multi_reduction <maximumf>, %116, %cst_36 [2] : vector<2x8x4xf32> to vector<2x8xf32>
    %cst_37 = arith.constant 0xFF800000 : f32
    %118 = vector.broadcast %cst_37 : f32 to vector<2x8xf32>
    %119 = arith.maximumf %118, %117 : vector<2x8xf32>
    %120 = vector.shape_cast %119 : vector<2x8xf32> to vector<2x8x1xf32>
    %121 = vector.broadcast %120 : vector<2x8x1xf32> to vector<2x8x4xf32>
    %122 = arith.subf %116, %121 : vector<2x8x4xf32>
    %123 = math.exp %122 : vector<2x8x4xf32>
    %cst_38 = arith.constant dense<0.000000e+00> : vector<2x8xf32>
    %124 = vector.multi_reduction <add>, %123, %cst_38 [2] : vector<2x8x4xf32> to vector<2x8xf32>
    %125 = vector.shape_cast %124 : vector<2x8xf32> to vector<2x8x1xf32>
    %126 = vector.broadcast %125 : vector<2x8x1xf32> to vector<2x8x4xf32>
    %127 = arith.divf %123, %126 : vector<2x8x4xf32>
    %128 = arith.truncf %127 : vector<2x8x4xf32> to vector<2x8x4xbf16>
    "tpu.trace_start"() <{level = 10 : i32, message = "btn,bnd->btd"}> : () -> ()
    %cst_39 = arith.constant dense<0.000000e+00> : vector<2x8x8xf32>
    %129 = tpu.matmul %128, %113, %cst_39 {dimension_numbers = #tpu.dot_dimension_numbers<[2], [1], [1], [2], [0, 0, 0, 1, 1, 2], [0], [0]>} : vector<2x8x4xbf16>, vector<2x4x8xbf16>, vector<2x8x8xf32> -> vector<2x8x8xf32>
    "tpu.trace_stop"() : () -> ()
    %130 = vector.extract_strided_slice %74 {offsets = [0, 0, 16], sizes = [2, 8, 8], strides = [1, 1, 1]} : vector<2x8x32xf32> to vector<2x8x8xf32>
    %131 = arith.truncf %130 : vector<2x8x8xf32> to vector<2x8x8xbf16>
    %132 = vector.extract_strided_slice %81 {offsets = [0, 0, 16], sizes = [2, 4, 8], strides = [1, 1, 1]} : vector<2x4x32xf32> to vector<2x4x8xf32>
    %133 = arith.truncf %132 : vector<2x4x8xf32> to vector<2x4x8xbf16>
    %134 = vector.extract_strided_slice %85 {offsets = [0, 0, 16], sizes = [2, 4, 8], strides = [1, 1, 1]} : vector<2x4x32xf32> to vector<2x4x8xf32>
    %135 = arith.truncf %134 : vector<2x4x8xf32> to vector<2x4x8xbf16>
    "tpu.trace_start"() <{level = 10 : i32, message = "btd,bnd->btn"}> : () -> ()
    %cst_40 = arith.constant dense<0.000000e+00> : vector<2x8x4xf32>
    %136 = tpu.matmul %131, %133, %cst_40 {dimension_numbers = #tpu.dot_dimension_numbers<[2], [2], [1], [1], [0, 0, 0, 1, 1, 1], [0], [0]>} : vector<2x8x8xbf16>, vector<2x4x8xbf16>, vector<2x8x4xf32> -> vector<2x8x4xf32>
    "tpu.trace_stop"() : () -> ()
    %cst_41 = arith.constant 0.353553385 : f32
    %137 = vector.broadcast %cst_41 : f32 to vector<2x8x4xf32>
    %138 = arith.mulf %136, %137 : vector<2x8x4xf32>
    %cst_42 = arith.constant dense<0xFF800000> : vector<2x8xf32>
    %139 = vector.multi_reduction <maximumf>, %138, %cst_42 [2] : vector<2x8x4xf32> to vector<2x8xf32>
    %cst_43 = arith.constant 0xFF800000 : f32
    %140 = vector.broadcast %cst_43 : f32 to vector<2x8xf32>
    %141 = arith.maximumf %140, %139 : vector<2x8xf32>
    %142 = vector.shape_cast %141 : vector<2x8xf32> to vector<2x8x1xf32>
    %143 = vector.broadcast %142 : vector<2x8x1xf32> to vector<2x8x4xf32>
    %144 = arith.subf %138, %143 : vector<2x8x4xf32>
    %145 = math.exp %144 : vector<2x8x4xf32>
    %cst_44 = arith.constant dense<0.000000e+00> : vector<2x8xf32>
    %146 = vector.multi_reduction <add>, %145, %cst_44 [2] : vector<2x8x4xf32> to vector<2x8xf32>
    %147 = vector.shape_cast %146 : vector<2x8xf32> to vector<2x8x1xf32>
    %148 = vector.broadcast %147 : vector<2x8x1xf32> to vector<2x8x4xf32>
    %149 = arith.divf %145, %148 : vector<2x8x4xf32>
    %150 = arith.truncf %149 : vector<2x8x4xf32> to vector<2x8x4xbf16>
    "tpu.trace_start"() <{level = 10 : i32, message = "btn,bnd->btd"}> : () -> ()
    %cst_45 = arith.constant dense<0.000000e+00> : vector<2x8x8xf32>
    %151 = tpu.matmul %150, %135, %cst_45 {dimension_numbers = #tpu.dot_dimension_numbers<[2], [1], [1], [2], [0, 0, 0, 1, 1, 2], [0], [0]>} : vector<2x8x4xbf16>, vector<2x4x8xbf16>, vector<2x8x8xf32> -> vector<2x8x8xf32>
    "tpu.trace_stop"() : () -> ()
    %152 = vector.extract_strided_slice %74 {offsets = [0, 0, 24], sizes = [2, 8, 8], strides = [1, 1, 1]} : vector<2x8x32xf32> to vector<2x8x8xf32>
    %153 = arith.truncf %152 : vector<2x8x8xf32> to vector<2x8x8xbf16>
    %154 = vector.extract_strided_slice %81 {offsets = [0, 0, 24], sizes = [2, 4, 8], strides = [1, 1, 1]} : vector<2x4x32xf32> to vector<2x4x8xf32>
    %155 = arith.truncf %154 : vector<2x4x8xf32> to vector<2x4x8xbf16>
    %156 = vector.extract_strided_slice %85 {offsets = [0, 0, 24], sizes = [2, 4, 8], strides = [1, 1, 1]} : vector<2x4x32xf32> to vector<2x4x8xf32>
    %157 = arith.truncf %156 : vector<2x4x8xf32> to vector<2x4x8xbf16>
    "tpu.trace_start"() <{level = 10 : i32, message = "btd,bnd->btn"}> : () -> ()
    %cst_46 = arith.constant dense<0.000000e+00> : vector<2x8x4xf32>
    %158 = tpu.matmul %153, %155, %cst_46 {dimension_numbers = #tpu.dot_dimension_numbers<[2], [2], [1], [1], [0, 0, 0, 1, 1, 1], [0], [0]>} : vector<2x8x8xbf16>, vector<2x4x8xbf16>, vector<2x8x4xf32> -> vector<2x8x4xf32>
    "tpu.trace_stop"() : () -> ()
    %cst_47 = arith.constant 0.353553385 : f32
    %159 = vector.broadcast %cst_47 : f32 to vector<2x8x4xf32>
    %160 = arith.mulf %158, %159 : vector<2x8x4xf32>
    %cst_48 = arith.constant dense<0xFF800000> : vector<2x8xf32>
    %161 = vector.multi_reduction <maximumf>, %160, %cst_48 [2] : vector<2x8x4xf32> to vector<2x8xf32>
    %cst_49 = arith.constant 0xFF800000 : f32
    %162 = vector.broadcast %cst_49 : f32 to vector<2x8xf32>
    %163 = arith.maximumf %162, %161 : vector<2x8xf32>
    %164 = vector.shape_cast %163 : vector<2x8xf32> to vector<2x8x1xf32>
    %165 = vector.broadcast %164 : vector<2x8x1xf32> to vector<2x8x4xf32>
    %166 = arith.subf %160, %165 : vector<2x8x4xf32>
    %167 = math.exp %166 : vector<2x8x4xf32>
    %cst_50 = arith.constant dense<0.000000e+00> : vector<2x8xf32>
    %168 = vector.multi_reduction <add>, %167, %cst_50 [2] : vector<2x8x4xf32> to vector<2x8xf32>
    %169 = vector.shape_cast %168 : vector<2x8xf32> to vector<2x8x1xf32>
    %170 = vector.broadcast %169 : vector<2x8x1xf32> to vector<2x8x4xf32>
    %171 = arith.divf %167, %170 : vector<2x8x4xf32>
    %172 = arith.truncf %171 : vector<2x8x4xf32> to vector<2x8x4xbf16>
    "tpu.trace_start"() <{level = 10 : i32, message = "btn,bnd->btd"}> : () -> ()
    %cst_51 = arith.constant dense<0.000000e+00> : vector<2x8x8xf32>
    %173 = tpu.matmul %172, %157, %cst_51 {dimension_numbers = #tpu.dot_dimension_numbers<[2], [1], [1], [2], [0, 0, 0, 1, 1, 2], [0], [0]>} : vector<2x8x4xbf16>, vector<2x4x8xbf16>, vector<2x8x8xf32> -> vector<2x8x8xf32>
    "tpu.trace_stop"() : () -> ()
    %174 = tpu.concatenate %107, %129, %151, %173 in 2 : vector<2x8x8xf32>, vector<2x8x8xf32>, vector<2x8x8xf32>, vector<2x8x8xf32> -> vector<2x8x32xf32>
    %c0_52 = arith.constant 0 : index
    %c0_53 = arith.constant 0 : index
    %c0_54 = arith.constant 0 : index
    %175 = vector.load %arg4[%c0_52, %c0_53, %c0_54] : memref<2x8x1xf32, #tpu.memory_space<vmem>>, vector<2x8x1xf32>
    %176 = vector.broadcast %175 : vector<2x8x1xf32> to vector<2x8x32xf32>
    %177 = arith.mulf %174, %176 : vector<2x8x32xf32>
    %c0_55 = arith.constant 0 : index
    %c0_56 = arith.constant 0 : index
    %c0_57 = arith.constant 0 : index
    %178 = vector.load %arg5[%c0_55, %c0_56, %c0_57] : memref<2x1x32xf32, #tpu.memory_space<vmem>>, vector<2x1x32xf32>
    %c0_58 = arith.constant 0 : index
    %c0_59 = arith.constant 0 : index
    %c0_60 = arith.constant 0 : index
    %179 = vector.load %arg6[%c0_58, %c0_59, %c0_60] : memref<2x1x32xf32, #tpu.memory_space<vmem>>, vector<2x1x32xf32>
    %cst_61 = arith.constant dense<0.000000e+00> : vector<2x8xf32>
    %180 = vector.multi_reduction <add>, %177, %cst_61 [2] : vector<2x8x32xf32> to vector<2x8xf32>
    %181 = vector.shape_cast %180 : vector<2x8xf32> to vector<2x8x1xf32>
    %cst_62 = arith.constant 3.200000e+01 : f32
    %182 = vector.broadcast %cst_62 : f32 to vector<2x8x1xf32>
    %183 = arith.divf %181, %182 : vector<2x8x1xf32>
    %184 = vector.broadcast %183 : vector<2x8x1xf32> to vector<2x8x32xf32>
    %185 = arith.subf %177, %184 : vector<2x8x32xf32>
    %186 = arith.mulf %185, %185 : vector<2x8x32xf32>
    %cst_63 = arith.constant dense<0.000000e+00> : vector<2x8xf32>
    %187 = vector.multi_reduction <add>, %186, %cst_63 [2] : vector<2x8x32xf32> to vector<2x8xf32>
    %188 = vector.shape_cast %187 : vector<2x8xf32> to vector<2x8x1xf32>
    %cst_64 = arith.constant 3.200000e+01 : f32
    %189 = vector.broadcast %cst_64 : f32 to vector<2x8x1xf32>
    %190 = arith.divf %188, %189 : vector<2x8x1xf32>
    %cst_65 = arith.constant 9.99999974E-6 : f32
    %191 = vector.broadcast %cst_65 : f32 to vector<2x8x1xf32>
    %192 = arith.addf %190, %191 : vector<2x8x1xf32>
    %193 = math.rsqrt %192 : vector<2x8x1xf32>
    %194 = vector.broadcast %193 : vector<2x8x1xf32> to vector<2x8x32xf32>
    %195 = arith.mulf %185, %194 : vector<2x8x32xf32>
    %196 = vector.shape_cast %9 : vector<1x32xf32> to vector<1x1x32xf32>
    %197 = vector.broadcast %196 : vector<1x1x32xf32> to vector<2x8x32xf32>
    %198 = arith.mulf %195, %197 : vector<2x8x32xf32>
    %199 = vector.shape_cast %10 : vector<1x32xf32> to vector<1x1x32xf32>
    %200 = vector.broadcast %199 : vector<1x1x32xf32> to vector<2x8x32xf32>
    %201 = arith.addf %198, %200 : vector<2x8x32xf32>
    %cst_66 = arith.constant 1.000000e+00 : f32
    %202 = vector.broadcast %cst_66 : f32 to vector<2x1x32xf32>
    %203 = arith.addf %202, %178 : vector<2x1x32xf32>
    %204 = vector.broadcast %203 : vector<2x1x32xf32> to vector<2x8x32xf32>
    %205 = arith.mulf %201, %204 : vector<2x8x32xf32>
    %206 = vector.broadcast %179 : vector<2x1x32xf32> to vector<2x8x32xf32>
    %207 = arith.addf %205, %206 : vector<2x8x32xf32>
    %208 = arith.negf %207 : vector<2x8x32xf32>
    %209 = math.exp %208 : vector<2x8x32xf32>
    %cst_67 = arith.constant 1.000000e+00 : f32
    %210 = vector.broadcast %cst_67 : f32 to vector<2x8x32xf32>
    %211 = arith.addf %210, %209 : vector<2x8x32xf32>
    %212 = arith.divf %210, %211 : vector<2x8x32xf32>
    %213 = arith.mulf %207, %212 : vector<2x8x32xf32>
    %214 = vector.shape_cast %213 : vector<2x8x32xf32> to vector<16x32xf32>
    %215 = arith.truncf %214 : vector<16x32xf32> to vector<16x32xbf16>
    %c0_68 = arith.constant 0 : index
    %c0_69 = arith.constant 0 : index
    %216 = vector.load %arg14[%c0_68, %c0_69] : memref<32x32xbf16, #tpu.memory_space<vmem>>, vector<32x32xbf16>
    %cst_70 = arith.constant dense<0.000000e+00> : vector<16x32xf32>
    %217 = tpu.matmul %215, %216, %cst_70 {dimension_numbers = #tpu.dot_dimension_numbers<[1], [0], [0], [1], [0, 0, 1, 1], [], []>} : vector<16x32xbf16>, vector<32x32xbf16>, vector<16x32xf32> -> vector<16x32xf32>
    %218 = vector.broadcast %11 : vector<1x32xf32> to vector<16x32xf32>
    %219 = arith.addf %217, %218 : vector<16x32xf32>
    %220 = arith.addf %28, %219 : vector<16x32xf32>
    %221 = arith.truncf %220 : vector<16x32xf32> to vector<16x32xbf16>
    %c0_71 = arith.constant 0 : index
    %c0_72 = arith.constant 0 : index
    %222 = vector.load %arg15[%c0_71, %c0_72] : memref<32x64xbf16, #tpu.memory_space<vmem>>, vector<32x64xbf16>
    %cst_73 = arith.constant dense<0.000000e+00> : vector<16x64xf32>
    %223 = tpu.matmul %221, %222, %cst_73 {dimension_numbers = #tpu.dot_dimension_numbers<[1], [0], [0], [1], [0, 0, 1, 1], [], []>} : vector<16x32xbf16>, vector<32x64xbf16>, vector<16x64xf32> -> vector<16x64xf32>
    %c0_74 = arith.constant 0 : index
    %c0_75 = arith.constant 0 : index
    %224 = vector.load %arg10[%c0_74, %c0_75] : memref<1x64xf32, #tpu.memory_space<vmem>>, vector<1x64xf32>
    %225 = vector.broadcast %224 : vector<1x64xf32> to vector<16x64xf32>
    %226 = arith.addf %223, %225 : vector<16x64xf32>
    %cst_76 = arith.constant 5.000000e-01 : f32
    %227 = vector.broadcast %cst_76 : f32 to vector<16x64xf32>
    %228 = arith.mulf %227, %226 : vector<16x64xf32>
    %cst_77 = arith.constant 0.707106769 : f32
    %229 = vector.broadcast %cst_77 : f32 to vector<16x64xf32>
    %230 = arith.mulf %226, %229 : vector<16x64xf32>
    %cst_78 = arith.constant 0.000000e+00 : f32
    %231 = vector.broadcast %cst_78 : f32 to vector<16x64xf32>
    %232 = arith.cmpf oge, %230, %231 : vector<16x64xf32>
    %cst_79 = arith.constant 1.000000e+00 : f32
    %cst_80 = arith.constant -1.000000e+00 : f32
    %233 = vector.broadcast %cst_79 : f32 to vector<16x64xf32>
    %234 = vector.broadcast %cst_80 : f32 to vector<16x64xf32>
    %235 = arith.select %232, %233, %234 : vector<16x64xi1>, vector<16x64xf32>
    %236 = math.absf %230 : vector<16x64xf32>
    %cst_81 = arith.constant 0.327591091 : f32
    %237 = vector.broadcast %cst_81 : f32 to vector<16x64xf32>
    %238 = arith.mulf %237, %236 : vector<16x64xf32>
    %cst_82 = arith.constant 1.000000e+00 : f32
    %239 = vector.broadcast %cst_82 : f32 to vector<16x64xf32>
    %240 = arith.addf %239, %238 : vector<16x64xf32>
    %cst_83 = arith.constant 1.000000e+00 : f32
    %241 = vector.broadcast %cst_83 : f32 to vector<16x64xf32>
    %242 = arith.divf %241, %240 : vector<16x64xf32>
    %cst_84 = arith.constant 1.06140542 : f32
    %243 = vector.broadcast %cst_84 : f32 to vector<16x64xf32>
    %244 = arith.mulf %243, %242 : vector<16x64xf32>
    %cst_85 = arith.constant -1.45315206 : f32
    %245 = vector.broadcast %cst_85 : f32 to vector<16x64xf32>
    %246 = arith.addf %244, %245 : vector<16x64xf32>
    %247 = arith.mulf %246, %242 : vector<16x64xf32>
    %cst_86 = arith.constant 1.42141378 : f32
    %248 = vector.broadcast %cst_86 : f32 to vector<16x64xf32>
    %249 = arith.addf %247, %248 : vector<16x64xf32>
    %250 = arith.mulf %249, %242 : vector<16x64xf32>
    %cst_87 = arith.constant -0.284496725 : f32
    %251 = vector.broadcast %cst_87 : f32 to vector<16x64xf32>
    %252 = arith.addf %250, %251 : vector<16x64xf32>
    %253 = arith.mulf %252, %242 : vector<16x64xf32>
    %cst_88 = arith.constant 0.254829586 : f32
    %254 = vector.broadcast %cst_88 : f32 to vector<16x64xf32>
    %255 = arith.addf %253, %254 : vector<16x64xf32>
    %256 = arith.mulf %255, %242 : vector<16x64xf32>
    %cst_89 = arith.constant 0.000000e+00 : f32
    %257 = vector.broadcast %cst_89 : f32 to vector<16x64xf32>
    %258 = arith.subf %257, %236 : vector<16x64xf32>
    %259 = arith.mulf %258, %236 : vector<16x64xf32>
    %260 = math.exp %259 : vector<16x64xf32>
    %261 = arith.mulf %256, %260 : vector<16x64xf32>
    %cst_90 = arith.constant 1.000000e+00 : f32
    %262 = vector.broadcast %cst_90 : f32 to vector<16x64xf32>
    %263 = arith.subf %262, %261 : vector<16x64xf32>
    %264 = arith.mulf %235, %263 : vector<16x64xf32>
    %cst_91 = arith.constant 1.000000e+00 : f32
    %265 = vector.broadcast %cst_91 : f32 to vector<16x64xf32>
    %266 = arith.addf %265, %264 : vector<16x64xf32>
    %267 = arith.mulf %228, %266 : vector<16x64xf32>
    %268 = arith.truncf %267 : vector<16x64xf32> to vector<16x64xbf16>
    %c0_92 = arith.constant 0 : index
    %c0_93 = arith.constant 0 : index
    %269 = vector.load %arg16[%c0_92, %c0_93] : memref<64x32xbf16, #tpu.memory_space<vmem>>, vector<64x32xbf16>
    %cst_94 = arith.constant dense<0.000000e+00> : vector<16x32xf32>
    %270 = tpu.matmul %268, %269, %cst_94 {dimension_numbers = #tpu.dot_dimension_numbers<[1], [0], [0], [1], [0, 0, 1, 1], [], []>} : vector<16x64xbf16>, vector<64x32xbf16>, vector<16x32xf32> -> vector<16x32xf32>
    %271 = vector.broadcast %12 : vector<1x32xf32> to vector<16x32xf32>
    %272 = arith.addf %270, %271 : vector<16x32xf32>
    %273 = vector.shape_cast %272 : vector<16x32xf32> to vector<2x8x32xf32>
    %c0_95 = arith.constant 0 : index
    %c0_96 = arith.constant 0 : index
    %c0_97 = arith.constant 0 : index
    %274 = vector.load %arg7[%c0_95, %c0_96, %c0_97] : memref<2x1x32xf32, #tpu.memory_space<vmem>>, vector<2x1x32xf32>
    %c0_98 = arith.constant 0 : index
    %c0_99 = arith.constant 0 : index
    %c0_100 = arith.constant 0 : index
    %275 = vector.load %arg8[%c0_98, %c0_99, %c0_100] : memref<2x1x32xf32, #tpu.memory_space<vmem>>, vector<2x1x32xf32>
    %cst_101 = arith.constant dense<0.000000e+00> : vector<2x8xf32>
    %276 = vector.multi_reduction <add>, %273, %cst_101 [2] : vector<2x8x32xf32> to vector<2x8xf32>
    %277 = vector.shape_cast %276 : vector<2x8xf32> to vector<2x8x1xf32>
    %cst_102 = arith.constant 3.200000e+01 : f32
    %278 = vector.broadcast %cst_102 : f32 to vector<2x8x1xf32>
    %279 = arith.divf %277, %278 : vector<2x8x1xf32>
    %280 = vector.broadcast %279 : vector<2x8x1xf32> to vector<2x8x32xf32>
    %281 = arith.subf %273, %280 : vector<2x8x32xf32>
    %282 = arith.mulf %281, %281 : vector<2x8x32xf32>
    %cst_103 = arith.constant dense<0.000000e+00> : vector<2x8xf32>
    %283 = vector.multi_reduction <add>, %282, %cst_103 [2] : vector<2x8x32xf32> to vector<2x8xf32>
    %284 = vector.shape_cast %283 : vector<2x8xf32> to vector<2x8x1xf32>
    %cst_104 = arith.constant 3.200000e+01 : f32
    %285 = vector.broadcast %cst_104 : f32 to vector<2x8x1xf32>
    %286 = arith.divf %284, %285 : vector<2x8x1xf32>
    %cst_105 = arith.constant 9.99999974E-6 : f32
    %287 = vector.broadcast %cst_105 : f32 to vector<2x8x1xf32>
    %288 = arith.addf %286, %287 : vector<2x8x1xf32>
    %289 = math.rsqrt %288 : vector<2x8x1xf32>
    %290 = vector.broadcast %289 : vector<2x8x1xf32> to vector<2x8x32xf32>
    %291 = arith.mulf %281, %290 : vector<2x8x32xf32>
    %292 = vector.shape_cast %13 : vector<1x32xf32> to vector<1x1x32xf32>
    %293 = vector.broadcast %292 : vector<1x1x32xf32> to vector<2x8x32xf32>
    %294 = arith.mulf %291, %293 : vector<2x8x32xf32>
    %295 = vector.shape_cast %14 : vector<1x32xf32> to vector<1x1x32xf32>
    %296 = vector.broadcast %295 : vector<1x1x32xf32> to vector<2x8x32xf32>
    %297 = arith.addf %294, %296 : vector<2x8x32xf32>
    %cst_106 = arith.constant 1.000000e+00 : f32
    %298 = vector.broadcast %cst_106 : f32 to vector<2x1x32xf32>
    %299 = arith.addf %298, %274 : vector<2x1x32xf32>
    %300 = vector.broadcast %299 : vector<2x1x32xf32> to vector<2x8x32xf32>
    %301 = arith.mulf %297, %300 : vector<2x8x32xf32>
    %302 = vector.broadcast %275 : vector<2x1x32xf32> to vector<2x8x32xf32>
    %303 = arith.addf %301, %302 : vector<2x8x32xf32>
    %304 = arith.negf %303 : vector<2x8x32xf32>
    %305 = math.exp %304 : vector<2x8x32xf32>
    %cst_107 = arith.constant 1.000000e+00 : f32
    %306 = vector.broadcast %cst_107 : f32 to vector<2x8x32xf32>
    %307 = arith.addf %306, %305 : vector<2x8x32xf32>
    %308 = arith.divf %306, %307 : vector<2x8x32xf32>
    %309 = arith.mulf %303, %308 : vector<2x8x32xf32>
    %310 = vector.shape_cast %309 : vector<2x8x32xf32> to vector<16x32xf32>
    %311 = arith.truncf %310 : vector<16x32xf32> to vector<16x32xbf16>
    %c0_108 = arith.constant 0 : index
    %c0_109 = arith.constant 0 : index
    %312 = vector.load %arg17[%c0_108, %c0_109] : memref<32x32xbf16, #tpu.memory_space<vmem>>, vector<32x32xbf16>
    %cst_110 = arith.constant dense<0.000000e+00> : vector<16x32xf32>
    %313 = tpu.matmul %311, %312, %cst_110 {dimension_numbers = #tpu.dot_dimension_numbers<[1], [0], [0], [1], [0, 0, 1, 1], [], []>} : vector<16x32xbf16>, vector<32x32xbf16>, vector<16x32xf32> -> vector<16x32xf32>
    %314 = vector.broadcast %15 : vector<1x32xf32> to vector<16x32xf32>
    %315 = arith.addf %313, %314 : vector<16x32xf32>
    %316 = arith.addf %220, %315 : vector<16x32xf32>
    %317 = vector.shape_cast %316 : vector<16x32xf32> to vector<2x8x32xf32>
    %c0_111 = arith.constant 0 : index
    %c0_112 = arith.constant 0 : index
    %c0_113 = arith.constant 0 : index
    %318 = vector.load %arg19[%c0_111, %c0_112, %c0_113] : memref<2x8x32xf32, #tpu.memory_space<vmem>>, vector<2x8x32xf32>
    tpu.vector_store %arg19[%c0_111, %c0_112, %c0_113], %317 {strides = array<i32>} : memref<2x8x32xf32, #tpu.memory_space<vmem>>, vector<2x8x32xf32>,
    %319 = arith.truncf %316 : vector<16x32xf32> to vector<16x32xbf16>
    %c0_114 = arith.constant 0 : index
    %c0_115 = arith.constant 0 : index
    %320 = vector.load %arg18[%c0_114, %c0_115] : memref<32x32xbf16, #tpu.memory_space<vmem>>, vector<32x32xbf16>
    %cst_116 = arith.constant dense<0.000000e+00> : vector<16x32xf32>
    %321 = tpu.matmul %319, %320, %cst_116 {dimension_numbers = #tpu.dot_dimension_numbers<[1], [0], [0], [1], [0, 0, 1, 1], [], []>} : vector<16x32xbf16>, vector<32x32xbf16>, vector<16x32xf32> -> vector<16x32xf32>
    %322 = vector.broadcast %16 : vector<1x32xf32> to vector<16x32xf32>
    %323 = arith.addf %321, %322 : vector<16x32xf32>
    %324 = vector.shape_cast %323 : vector<16x32xf32> to vector<2x8x32xf32>
    %c0_117 = arith.constant 0 : index
    %c0_118 = arith.constant 0 : index
    %c0_119 = arith.constant 0 : index
    %325 = vector.load %arg20[%c0_117, %c0_118, %c0_119] : memref<2x8x32xf32, #tpu.memory_space<vmem>>, vector<2x8x32xf32>
    tpu.vector_store %arg20[%c0_117, %c0_118, %c0_119], %324 {strides = array<i32>} : memref<2x8x32xf32, #tpu.memory_space<vmem>>, vector<2x8x32xf32>,
    return
  }
  func.func @transform_0(%arg0: i32) -> (i32, i32, i32) {
    %c0_i32 = arith.constant 0 : i32
    %c0_i32_0 = arith.constant 0 : i32
    %c0_i32_1 = arith.constant 0 : i32
    return %arg0, %c0_i32, %c0_i32_0 : i32, i32, i32
  }
  func.func @transform_1(%arg0: i32) -> (i32, i32, i32) {
    %c0_i32 = arith.constant 0 : i32
    %c0_i32_0 = arith.constant 0 : i32
    %c0_i32_1 = arith.constant 0 : i32
    return %arg0, %c0_i32, %c0_i32_0 : i32, i32, i32
  }
  func.func @transform_2(%arg0: i32) -> (i32, i32, i32) {
    %c0_i32 = arith.constant 0 : i32
    %c0_i32_0 = arith.constant 0 : i32
    %c0_i32_1 = arith.constant 0 : i32
    return %arg0, %c0_i32, %c0_i32_0 : i32, i32, i32
  }
  func.func @transform_3(%arg0: i32) -> (i32, i32, i32) {
    %c0_i32 = arith.constant 0 : i32
    %c0_i32_0 = arith.constant 0 : i32
    %c0_i32_1 = arith.constant 0 : i32
    return %arg0, %c0_i32, %c0_i32_0 : i32, i32, i32
  }
  func.func @transform_4(%arg0: i32) -> (i32, i32, i32) {
    %c0_i32 = arith.constant 0 : i32
    %c0_i32_0 = arith.constant 0 : i32
    %c0_i32_1 = arith.constant 0 : i32
    return %arg0, %c0_i32, %c0_i32_0 : i32, i32, i32
  }
  func.func @transform_5(%arg0: i32) -> (i32, i32, i32) {
    %c0_i32 = arith.constant 0 : i32
    %c0_i32_0 = arith.constant 0 : i32
    %c0_i32_1 = arith.constant 0 : i32
    return %arg0, %c0_i32, %c0_i32_0 : i32, i32, i32
  }
  func.func @transform_6(%arg0: i32) -> (i32, i32, i32) {
    %c0_i32 = arith.constant 0 : i32
    %c0_i32_0 = arith.constant 0 : i32
    %c0_i32_1 = arith.constant 0 : i32
    return %arg0, %c0_i32, %c0_i32_0 : i32, i32, i32
  }
  func.func @transform_7(%arg0: i32) -> (i32, i32, i32) {
    %c0_i32 = arith.constant 0 : i32
    %c0_i32_0 = arith.constant 0 : i32
    %c0_i32_1 = arith.constant 0 : i32
    return %arg0, %c0_i32, %c0_i32_0 : i32, i32, i32
  }
  func.func @transform_8(%arg0: i32) -> (i32, i32) {
    %c0_i32 = arith.constant 0 : i32
    %c0_i32_0 = arith.constant 0 : i32
    %c0_i32_1 = arith.constant 0 : i32
    return %c0_i32, %c0_i32_0 : i32, i32
  }
  func.func @transform_9(%arg0: i32) -> (i32, i32) {
    %c0_i32 = arith.constant 0 : i32
    %c0_i32_0 = arith.constant 0 : i32
    %c0_i32_1 = arith.constant 0 : i32
    return %c0_i32, %c0_i32_0 : i32, i32
  }
  func.func @transform_10(%arg0: i32) -> (i32, i32) {
    %c0_i32 = arith.constant 0 : i32
    %c0_i32_0 = arith.constant 0 : i32
    %c0_i32_1 = arith.constant 0 : i32
    return %c0_i32, %c0_i32_0 : i32, i32
  }
  func.func @transform_11(%arg0: i32) -> (i32, i32) {
    %c0_i32 = arith.constant 0 : i32
    %c0_i32_0 = arith.constant 0 : i32
    %c0_i32_1 = arith.constant 0 : i32
    return %c0_i32, %c0_i32_0 : i32, i32
  }
  func.func @transform_12(%arg0: i32) -> (i32, i32) {
    %c0_i32 = arith.constant 0 : i32
    %c0_i32_0 = arith.constant 0 : i32
    %c0_i32_1 = arith.constant 0 : i32
    return %c0_i32, %c0_i32_0 : i32, i32
  }
  func.func @transform_13(%arg0: i32) -> (i32, i32) {
    %c0_i32 = arith.constant 0 : i32
    %c0_i32_0 = arith.constant 0 : i32
    %c0_i32_1 = arith.constant 0 : i32
    return %c0_i32, %c0_i32_0 : i32, i32
  }
  func.func @transform_14(%arg0: i32) -> (i32, i32) {
    %c0_i32 = arith.constant 0 : i32
    %c0_i32_0 = arith.constant 0 : i32
    %c0_i32_1 = arith.constant 0 : i32
    return %c0_i32, %c0_i32_0 : i32, i32
  }
  func.func @transform_15(%arg0: i32) -> (i32, i32) {
    %c0_i32 = arith.constant 0 : i32
    %c0_i32_0 = arith.constant 0 : i32
    %c0_i32_1 = arith.constant 0 : i32
    return %c0_i32, %c0_i32_0 : i32, i32
  }
  func.func @transform_16(%arg0: i32) -> (i32, i32) {
    %c0_i32 = arith.constant 0 : i32
    %c0_i32_0 = arith.constant 0 : i32
    %c0_i32_1 = arith.constant 0 : i32
    return %c0_i32, %c0_i32_0 : i32, i32
  }
  func.func @transform_17(%arg0: i32) -> (i32, i32) {
    %c0_i32 = arith.constant 0 : i32
    %c0_i32_0 = arith.constant 0 : i32
    %c0_i32_1 = arith.constant 0 : i32
    return %c0_i32, %c0_i32_0 : i32, i32
  }
  func.func @transform_18(%arg0: i32) -> (i32, i32, i32) {
    %c0_i32 = arith.constant 0 : i32
    %c0_i32_0 = arith.constant 0 : i32
    %c0_i32_1 = arith.constant 0 : i32
    return %arg0, %c0_i32, %c0_i32_0 : i32, i32, i32
  }
  func.func @transform_19(%arg0: i32) -> (i32, i32, i32) {
    %c0_i32 = arith.constant 0 : i32
    %c0_i32_0 = arith.constant 0 : i32
    %c0_i32_1 = arith.constant 0 : i32
    return %arg0, %c0_i32, %c0_i32_0 : i32, i32, i32
  }
}

</mosaic_0001>

<bundles_post_ra>
// kernel: control_t2m_block.1
= control target key start
LH: loop header
LB: loop body
LE: loop exit
PB: predicated region body
PF: predicated region fallthrough
CT: control target
= control target key end

     0   :  { %s3317_s0 = inlined_call_operand.vmem [shape: f32[4,8,32], index: 0, kind: input, shape index: {}]   ;;  %s3318_s1 = inlined_call_operand.vmem [shape: f32[4,8,32], index: 1, kind: input, shape index: {}]   ;;  %s3319_s2 = inlined_call_operand.vmem [shape: f32[4,4,32], index: 2, kind: input, shape index: {}]   ;;  %s3320_s3 = inlined_call_operand.vmem [shape: f32[4,8,1], index: 3, kind: input, shape index: {}]   ;;  %s3321_s4 = inlined_call_operand.vmem [shape: f32[4,1,32], index: 4, kind: input, shape index: {}]   ;;  %s3322_s5 = inlined_call_operand.vmem [shape: f32[4,1,32], index: 5, kind: input, shape index: {}]   ;;  %s3323_s6 = inlined_call_operand.vmem [shape: f32[4,1,32], index: 6, kind: input, shape index: {}]   ;;  %s3324_s7 = inlined_call_operand.vmem [shape: f32[4,1,32], index: 7, kind: input, shape index: {}]   ;;  %s3325_s8 = inlined_call_operand.vmem [shape: f32[16,32], index: 8, kind: input, shape index: {}]   ;;  %s3326_s9 = inlined_call_operand.vmem [shape: f32[1,64], index: 9, kind: input, shape index: {}]   ;;  %s3327_s10 = inlined_call_operand.vmem [shape: bf16[32,32], index: 10, kind: input, shape index: {}]   ;;  %s3328_s11 = inlined_call_operand.vmem [shape: bf16[32,32], index: 11, kind: input, shape index: {}]   ;;  %s3329_s12 = inlined_call_operand.vmem [shape: bf16[32,64], index: 12, kind: input, shape index: {}]   ;;  %s3330_s13 = inlined_call_operand.vmem [shape: bf16[32,32], index: 13, kind: input, shape index: {}]   ;;  %s3331_s14 = inlined_call_operand.vmem [shape: bf16[32,64], index: 14, kind: input, shape index: {}]   ;;  %s3332_s15 = inlined_call_operand.vmem [shape: bf16[64,32], index: 15, kind: input, shape index: {}]   ;;  %s3333_s16 = inlined_call_operand.vmem [shape: bf16[32,32], index: 16, kind: input, shape index: {}]   ;;  %s3334_s17 = inlined_call_operand.vmem [shape: bf16[32,32], index: 17, kind: input, shape index: {}]   ;;  %s3335_s18 = inlined_call_operand.hbm [shape: f32[4,8,32], index: 18, kind: output, shape index: {0}]   ;;  %s3336_s19 = inlined_call_operand.hbm [shape: f32[4,8,32], index: 19, kind: output, shape index: {1}]  }
   0x1   :  { %3348 = sst [smem:[#allocation14_spill]] %s3317_s0 }
   0x2   :  { %3349 = sst [smem:[#allocation15_spill]] %s3318_s1 }
   0x3   :  { %3350 = sst [smem:[#allocation16_spill]] %s3319_s2 }
   0x4   :  { %3351 = sst [smem:[#allocation17_spill]] %s3320_s3 }
   0x5   :  { %3352 = sst [smem:[#allocation18_spill]] %s3321_s4 }
   0x6   :  { %3353 = sst [smem:[#allocation19_spill]] %s3322_s5 }
   0x7   :  { %3354 = sst [smem:[#allocation20_spill]] %s3336_s19 }
   0x8   :  { %25 = vsyncpa [#allocation3], 0 }
   0x9   :  { %27 = vsyncpa [#allocation3 + $0x1], 0 }
   0xa   :  { %28 = vsyncpa [#allocation5], 0 }
   0xb   :  { %30 = vsyncpa [#allocation5 + $0x1], 0  ;;  %s2861_s0 = smov 0   ;;  %s2863_s30 = smov 0  }
   0xc   :  { %s2865_s20 = smov 0   ;;  %s2867_s21 = smov 0  }
   0xd LB: > { %3355 = sst [smem:[#allocation8_spill]] %s2730_s0  ;;  %s2882_s1 = sadd.s32 4294967295, %s2742_s21   ;;  %s2742_s21 = sphi %s2867_s21, %s3378_s21   ;;  %s2738_s20 = sphi %s2865_s20, %s3380_s20   ;;  %s2734_s30 = sphi %s2863_s30, %s3382_s30   ;;  %s2730_s0 = sphi %s2861_s0, %s3381_s0  }
   0xe   : > { %3356 = sst [smem:[#allocation9_spill]] %s2738_s20  ;;  %s2361_s22 = sadd.s32 4294967294, %s2742_s21  }
   0xf   : > { %3357 = sst [smem:[#allocation10_spill]] %s2742_s21  ;;  %s2886_s2 = sadd.s32 1, %s2742_s21  }
  0x10   : > { %3358 = sst [smem:[#allocation11_spill]] %s2886_s2  ;;  %s461_s23 = sadd.s32 1, %s2738_s20 }
  0x11   : > { %s458_s24 = ssub.s32 %s2742_s21, %s2886_s2  ;;  %p471_p0 = scmp.ne.s32.totalorder %s2738_s20, %s2734_s30 }
  0x12   : > { %p459_p1 = scmp.eq.s32.totalorder %s458_s24, 0  ;;  %p472_p2 = scmp.eq.s32.totalorder %s2882_s1, 1 }
  0x13   : > { %p477_p3 = scmp.ne.s32.totalorder %s2734_s30, %s2730_s0  ;;  %p478_p4 = scmp.eq.s32.totalorder %s2361_s22, 1 }
  0x14   : > { %s2897_s25 = scalar_select %p459_p1, %s2738_s20, %s461_s23  }
  0x15   : > { %p2899_p5 = por %p472_p2, %p471_p0  ;;  %p2903_p6 = por %p478_p4, %p477_p3 }
  0x16   : > { %3359 = sst [smem:[#allocation12_spill]] %s2897_s25  ;;  %p2364_p7 = scmp.ge.s32.totalorder %s2742_s21, 1 }
  0x17   : > { %s3361_s26 = scalar_select %p2903_p6, 1, 0 }
  0x18   : > { %p620_p8 = scmp.lt.s32.totalorder %s2742_s21, 3 }
  0x19   : > { %3362 = sst [smem:[#allocation13_spill]] %s3361_s26 }
  0x1a   : > { %p621_p9 = pnand %p2364_p7, %p620_p8 }
  0x1b   : > { %s2367_s29 = sshll.u32 (!%p621_p9), %s2882_s1, 1  ;;  %s3363_s28 = sld [smem:[#allocation15_spill]] (!%p621_p9) }
  0x1c   : > { %624 = sbr.rel (%p621_p9) target bundleno = 2762 (0xaca), region = 92  ;;  %p713_p10 = scmp.lt.s32.totalorder (!%p621_p9), %s2367_s29, 3 }
  0x1d   : > { %s3364_s21 = sld [smem:[#allocation16_spill]] (!%p621_p9)  ;;  %s2750_s26 = smov (!%p621_p9), 32  }
  0x1e   : > { %s2751_s22 = smov (!%p621_p9), 96   ;;  %s2752_s23 = smov (!%p621_p9), 88  }
  0x1f   : > { %s2753_s27 = smov (!%p621_p9), 80   ;;  %s2757_s0 = smov (!%p621_p9), 16  }
  0x20   : > { %s3369_s5 = sld [smem:[#allocation19_spill]] (!%p621_p9) }
  0x21   : > { %v2488_v0 = vld [vmem:[%s3327_s10 + $0x8] sm:$0xff]  ;;  %v2487_v1 = vld [vmem:[%s3327_s10] sm:$0xff]  ;;  %s3384_s29 = smov (!%p713_p10, %s2367_s29), 3  ;;  %vm785_vm0 = vcmask 261120   ;;  %v2744_v9 = vmov 32.0   ;;  %vm1030_vm11 = vcmask 64512  }
  0x22   : > { %795 = vmatpush.bf16.msra.mxu0 %v2488_v0  ;;  %s2919_s24 = sshll.u32 %s3384_s29, 3  ;;  %s2372_s25 = sshll.u32 %s3384_s29, 2  ;;  %2576 = vrcp.f32 %v2744_v9  ;;  %v2745_v15 = vmov 839922192   ;;  %v2746_v17 = vmov 1985246804  }
  0x23   : > { %s722_s2 = scalar_lea.vmem %s3363_s28, %s2919_s24  ;;  %s728_s19 = scalar_lea.vmem %s3364_s21, %s2372_s25  ;;  %v2931_v16 = vunpack.c.l.s4 %v2745_v15  ;;  %v2933_v18 = vunpack.c.l.s4 %v2746_v17  ;;  %v2938_v19 = vld [vmem:[%s3325_s8] sm:$0xff]  ;;  %v2492_v55 = vld [vmem:[%s3329_s12 + $0x8] sm:$0xff]  ;;  %vm1071_vm12 = vcmask 31744  }
  0x24   : > { %v763_v2 = vld [vmem:[%s722_s2] sm:$0xff]  ;;  %v764_v3 = vld [vmem:[%s722_s2 + $0x8] sm:$0xff]  ;;  %s3365_s2 = sld [smem:[#allocation14_spill]]  ;;  %v772_v21 = vperm.slane %v2938_v19, 0  ;;  %1003 = vmatpush.bf16.msra.mxu2 %v2492_v55  ;;  %v923_v0 = vperm.slane %v2938_v19, 3  ;;  %s2747_s21 = smov 120  }
  0x25   : > { %v765_v4 = vld [vmem:[%s728_s19] sm:$0xf]  ;;  %v767_v5 = vpack.c.bf16 %v764_v3, %v763_v2  ;;  %v766_v6 = vld [vmem:[%s728_s19 + $0x4] sm:$0xf]  ;;  %v876_v22 = vunpack.c.0.s8 %v2931_v16  ;;  %v880_v23 = vunpack.c.0.s8 %v2933_v18  ;;  %v929_v2 = vperm.slane %v2938_v19, 4  ;;  %v2490_v16 = vld [vmem:[%s3328_s11 + $0x8] sm:$0xff]  ;;  %s3223_s20 = scalar_lea.vmem %s3324_s7, %s3384_s29 }
  0x26   : > { %796 = vmatpush.bf16.msra.mxu0 %v2487_v1  ;;  %864 = vst [vmem:[#allocation1] ss:$2 sm:$0xff] %v765_v4  ;;  %v2491_v57 = vld [vmem:[%s3329_s12] sm:$0xff]  ;;  %962 = vmatpush.bf16.msra.mxu1 %v2490_v16  ;;  %s2754_s28 = smov 72   ;;  %s3345_s19 = smov 8  }
  0x27   : > { %866 = vst [vmem:[#allocation1 + $0x1] ss:$2 sm:$0xff] %v766_v6  ;;  %s3370_s4 = sld [smem:[#allocation18_spill]] }
  0x28   : > { %v2577_v10 = vpop.eup %2576  ;;  %1004 = vmatpush.bf16.msra.mxu2 %v2491_v57 }
  0x29   : > { %2387 = vmatmul.msk.bf16.vlgmr.msra.gmra.mxu0 %vm785_vm0, %v767_v5  ;;  %v812_v11 = vmul.f32 32.0, %v2577_v10  ;;  %vm816_vm1 = vweird.f32 %v2577_v10 }
  0x2a   : > { %s716_s25 = scalar_lea.vmem %s3365_s2, %s2919_s24  ;;  %s2748_s2 = smov 112  }
  0x2b   : > { %v813_v12 = vsub.f32 1.0, %v812_v11  ;;  %v761_v26 = vld [vmem:[%s716_s25] sm:$0xff]  ;;  %v762_v37 = vld [vmem:[%s716_s25 + $0x8] sm:$0xff]  ;;  %s2749_s25 = smov 104  }
  0x2d   : > { %v814_v13 = vmul.f32 %v2577_v10, %v813_v12 }
  0x2e   : > { %v867_v7 = vld.sshfl [vmem:[#allocation1] sm:$0xff pattern:$0x75316420] }
  0x2f   : > { %v869_v8 = vsel %vm785_vm0, %v867_v7, 0.0  ;;  %v815_v14 = vadd.f32 %v2577_v10, %v814_v13  ;;  %v931_v7 = vrot.slane %v929_v2, 4 }
  0x30   : > { %870 = vadd.xlane.f32.xlu0 %v869_v8 }
  0x31   : > { %v2940_v20 = vsel %vm816_vm1, %v2577_v10, %v815_v14  ;;  %vm1130_vm1 = vcmask 1041408  }
  0xa3   : > { %v871_v24 = vpop.xlane.xlu0 %870 }
  0xa4   : > { %v872_v25 = vmul.f32 %v871_v24, %v2940_v20 }
  0xa6   : > { %v798_v27 = vpop.f32.mrf.mxu0  ;;  %v877_v29 = vperm.slane %v872_v25, %v876_v22  ;;  %v881_v30 = vperm.slane %v872_v25, %v880_v23 }
  0xa7   : > { %v799_v28 = vadd.f32 %v798_v27, %v772_v21 }
  0xa8   : > { %v884_v32 = vsub.f32 %v765_v4, %v877_v29  ;;  %v885_v33 = vsub.f32 %v766_v6, %v881_v30  ;;  %v925_v4 = vrot.slane %v923_v0, 4 }
  0xa9   : > { %v2950_v31 = vadd.f32 %v799_v28, %v761_v26 }
  0xaa   : > { %v886_v34 = vmul.f32 %v884_v32, %v884_v32  ;;  %v887_v35 = vmul.f32 %v885_v33, %v885_v33 }
  0xab   : > { %v805_v36 = vsel %vm785_vm0, %v2950_v31, 0.0 }
  0xac   : > { %806 = vadd.xlane.f32.xlu0 %v805_v36  ;;  %890 = vst [vmem:[#allocation1] ss:$2 sm:$0xff] %v886_v34 }
  0xad   : > { %892 = vst [vmem:[#allocation1 + $0x1] ss:$2 sm:$0xff] %v887_v35 }
  0xae   : > { %v800_v38 = vpop.f32.mrf.mxu0 }
  0xaf   : > { %v801_v39 = vadd.f32 %v800_v38, %v772_v21  ;;  %v2489_v21 = vld [vmem:[%s3328_s11] sm:$0xff] }
  0xb0   : > { %963 = vmatpush.bf16.msra.mxu1 %v2489_v21 }
  0xb1   : > { %v2954_v40 = vadd.f32 %v801_v39, %v762_v37 }
  0xb3   : > { %v808_v41 = vsel %vm785_vm0, %v2954_v40, 0.0 }
  0xb4   : > { %809 = vadd.xlane.f32.xlu1 %v808_v41  ;;  %v893_v42 = vld.sshfl [vmem:[#allocation1] sm:$0xff pattern:$0x75316420]  ;;  %v856_v41 = vperm.slane %v2938_v19, 1 }
  0xb5   : > { %v895_v43 = vsel %vm785_vm0, %v893_v42, 0.0 }
  0xbc   : > { %896 = vadd.xlane.f32.xlu1 %v895_v43 }
 0x11f   : > { %v807_v44 = vpop.xlane.xlu0 %806 }
 0x120   : > { %v818_v45 = vmul.f32 %v2940_v20, %v807_v44 }
 0x122   : > { %v2961_v46 = vsub.f32 %v2950_v31, %v818_v45 }
 0x124   : > { %v822_v47 = vmul.f32 %v2961_v46, %v2961_v46 }
 0x126   : > { %v824_v48 = vsel %vm785_vm0, %v822_v47, 0.0  ;;  %v859_v47 = vperm.slane %v2938_v19, 2 }
 0x127   : > { %v810_v49 = vpop.xlane.xlu1 %809  ;;  %825 = vadd.xlane.f32.xlu2 %v824_v48 }
 0x128   : > { %v819_v50 = vmul.f32 %v2940_v20, %v810_v49 }
 0x12a   : > { %v2968_v51 = vsub.f32 %v2954_v40, %v819_v50 }
 0x12c   : > { %v823_v52 = vmul.f32 %v2968_v51, %v2968_v51 }
 0x12e   : > { %v827_v53 = vsel %vm785_vm0, %v823_v52, 0.0 }
 0x12f   : > { %v897_v54 = vpop.xlane.xlu1 %896  ;;  %828 = vadd.xlane.f32.xlu2 %v827_v53  ;;  %v1010_v53 = vperm.slane %v2938_v19, 6 }
 0x130   : > { %v898_v56 = vmul.f32 %v897_v54, %v2940_v20 }
 0x132   : > { %v899_v58 = vadd.f32 1e-05, %v898_v56 }
 0x134   : > { %2578 = vrsqrt.f32 %v899_v58  ;;  %vm906_vm2 = vweird.f32 %v899_v58 }
 0x13a   : > { %v2579_v59 = vpop.eup %2578 }
 0x13b   : > { %v901_v60 = vmul.f32 %v2579_v59, %v899_v58  ;;  %vm907_vm3 = vweird.f32 %v2579_v59 }
 0x13c   : > { %vm908_vm4 = vmor %vm906_vm2, %vm907_vm3 }
 0x13d   : > { %v902_v61 = vmul.f32 %v2579_v59, %v901_v60 }
 0x13f   : > { %v903_v62 = vmul.f32 0.5, %v902_v61 }
 0x141   : > { %v904_v63 = vsub.f32 1.5, %v903_v62 }
 0x143   : > { %v905_v1 = vmul.f32 %v2579_v59, %v904_v63 }
 0x145   : > { %v909_v3 = vsel %vm908_vm4, %v2579_v59, %v905_v1 }
 0x146   : > { %v914_v5 = vperm.slane %v909_v3, %v876_v22  ;;  %v918_v6 = vperm.slane %v909_v3, %v880_v23 }
 0x148   : > { %v921_v8 = vmul.f32 %v914_v5, %v884_v32  ;;  %v922_v9 = vmul.f32 %v918_v6, %v885_v33 }
 0x14a   : > { %v927_v10 = vmul.f32 %v923_v0, %v921_v8  ;;  %v928_v11 = vmul.f32 %v925_v4, %v922_v9  ;;  %v940_v0 = vperm.slane %v2938_v19, 5 }
 0x14c   : > { %v933_v12 = vadd.f32 %v929_v2, %v927_v10  ;;  %v934_v13 = vadd.f32 %v931_v7, %v928_v11 }
 0x14e   : > { %972 = vst [vmem:[#allocation1] ss:$2 sm:$0xff] %v933_v12 }
 0x14f   : > { %974 = vst [vmem:[#allocation1 + $0x1] ss:$2 sm:$0xff] %v934_v13 }
 0x156   : > { %v975_v14 = vld.sshfl [vmem:[#allocation1] sm:$0xff pattern:$0x75316420] }
 0x157   : > { %v977_v15 = vpack.c.bf16 %v975_v14, %v975_v14 }
 0x159   : > { %2405 = vmatmul.msk.bf16.vlgmr.msra.gmra.mxu2 %vm785_vm0, %v977_v15 }
 0x19a   : > { %v826_v17 = vpop.xlane.xlu2 %825 }
 0x19b   : > { %v830_v18 = vmul.f32 %v826_v17, %v2940_v20 }
 0x19d   : > { %v832_v22 = vadd.f32 1e-05, %v830_v18 }
 0x19f   : > { %2580 = vrsqrt.f32 %v832_v22  ;;  %vm840_vm6 = vweird.f32 %v832_v22 }
 0x1a2   : > { %v829_v23 = vpop.xlane.xlu2 %828 }
 0x1a3   : > { %v831_v24 = vmul.f32 %v829_v23, %v2940_v20 }
 0x1a5   : > { %v2581_v25 = vpop.eup %2580  ;;  %v833_v26 = vadd.f32 1e-05, %v831_v24 }
 0x1a6   : > { %v835_v27 = vmul.f32 %v2581_v25, %v832_v22  ;;  %vm841_vm5 = vweird.f32 %v2581_v25 }
 0x1a7   : > { %2582 = vrsqrt.f32 %v833_v26  ;;  %vm842_vm7 = vmor %vm840_vm6, %vm841_vm5  ;;  %vm850_vm9 = vweird.f32 %v833_v26 }
 0x1a8   : > { %v836_v28 = vmul.f32 %v2581_v25, %v835_v27 }
 0x1aa   : > { %v837_v29 = vmul.f32 0.5, %v836_v28 }
 0x1ac   : > { %v838_v30 = vsub.f32 1.5, %v837_v29 }
 0x1ad   : > { %v2583_v32 = vpop.eup %2582 }
 0x1ae   : > { %v839_v33 = vmul.f32 %v2581_v25, %v838_v30  ;;  %v845_v34 = vmul.f32 %v2583_v32, %v833_v26  ;;  %vm851_vm8 = vweird.f32 %v2583_v32 }
 0x1af   : > { %vm852_vm10 = vmor %vm850_vm9, %vm851_vm8 }
 0x1b0   : > { %v846_v35 = vmul.f32 %v2583_v32, %v845_v34  ;;  %v843_v36 = vsel %vm842_vm7, %v2581_v25, %v839_v33 }
 0x1b1   : > { %v854_v39 = vmul.f32 %v843_v36, %v2961_v46 }
 0x1b2   : > { %v847_v37 = vmul.f32 0.5, %v846_v35 }
 0x1b3   : > { %v857_v45 = vmul.f32 %v856_v41, %v854_v39  ;;  %v1015_v39 = vperm.slane %v2938_v19, 7 }
 0x1b4   : > { %v848_v38 = vsub.f32 1.5, %v847_v37 }
 0x1b5   : > { %v860_v49 = vadd.f32 %v859_v47, %v857_v45 }
 0x1b6   : > { %v849_v42 = vmul.f32 %v2583_v32, %v848_v38 }
 0x1b8   : > { %v853_v43 = vsel %vm852_vm10, %v2583_v32, %v849_v42 }
 0x1b9   : > { %v855_v44 = vmul.f32 %v853_v43, %v2968_v51 }
 0x1bb   : > { %v858_v48 = vmul.f32 %v856_v41, %v855_v44 }
 0x1bd   : > { %v861_v50 = vadd.f32 %v859_v47, %v858_v48 }
 0x1bf   : > { %v935_v52 = vpack.c.bf16 %v861_v50, %v860_v49 }
 0x1c1   : > { %2396 = vmatmul.msk.bf16.vlgmr.msra.gmra.mxu1 %vm785_vm0, %v935_v52 }
 0x1dc   : > { %v2997_v46 = vpop.f32.mrf.mxu2 }
 0x1dd   : > { %v1011_v54 = vadd.f32 %v1010_v53, %v2997_v46 }
 0x1df   : > { %v1026_v55 = vpack.c.bf16 %v1011_v54, %v1011_v54  ;;  %v1013_v56 = vrot.slane %v1011_v54, 4 }
 0x1e1   : > { %v1035_v51 = vsel %vm1030_vm11, %v1026_v55, 0  ;;  %v1177_v57 = vunpack.c.l.b16 %v1026_v55  ;;  %v1027_v58 = vpack.c.bf16 %v1013_v56, %v1013_v56 }
 0x1e2   : > { %1044 = vmatpush.bf16.xpose.msra.mxu3 %v1035_v51 }
 0x1e3   : > { %v1054_v59 = vsel %vm1030_vm11, %v1027_v58, 0  ;;  %v1178_v60 = vpack.c.b16 %v1177_v57, %v1177_v57  ;;  %v1206_v61 = vunpack.c.l.b16 %v1027_v58 }
 0x1e4   : > { %v1008_v62 = vpop.f32.mrf.mxu2  ;;  %1063 = vmatpush.bf16.xpose.msrb.mxu0 %v1054_v59 }
 0x1e5   : > { %1179 = vrot.lane.b32.xlu0 %v1178_v60, %s2747_s21  ;;  %v1207_v63 = vpack.c.b16 %v1206_v61, %v1206_v61 }
 0x1e7   : > { %1208 = vrot.lane.b32.xlu1 %v1207_v63, %s2747_s21 }
 0x1ef   : > { %1348 = vrot.lane.b32.xlu1 %v1207_v63, %s2748_s2 }
 0x1f7   : > { %1465 = vrot.lane.b32.xlu1 %v1178_v60, %s2749_s25 }
 0x23e   : > { %v965_v1 = vpop.f32.mrf.mxu1 }
 0x23f   : > { %v966_v2 = vadd.f32 %v965_v1, %v940_v0 }
 0x241   : > { %v1024_v3 = vpack.c.bf16 %v966_v2, %v966_v2 }
 0x243   : > { %v1172_v4 = vunpack.c.l.b16 %v1024_v3  ;;  %2406 = vmatmul.msk.bf16.vlgmr.msra.gmra.mxu3 %vm1030_vm11, %v1024_v3 }
 0x245   : > { %v1173_v5 = vpack.c.b16 %v1172_v4, %v1172_v4 }
 0x246   : > { %v967_v6 = vpop.f32.mrf.mxu1 }
 0x247   : > { %v968_v7 = vadd.f32 %v967_v6, %v940_v0  ;;  %1174 = vrot.lane.b32.xlu2 %v1173_v5, %s2747_s21 }
 0x249   : > { %v1025_v8 = vpack.c.bf16 %v968_v7, %v968_v7 }
 0x24b   : > { %v1201_v9 = vunpack.c.l.b16 %v1025_v8  ;;  %2407 = vmatmul.msk.bf16.vlgmr.msrb.gmra.mxu0 %vm1030_vm11, %v1025_v8 }
 0x24d   : > { %v1202_v10 = vpack.c.b16 %v1201_v9, %v1201_v9 }
 0x24f   : > { %1486 = vrot.lane.b32.xlu1 %v1202_v10, %s2749_s25  ;;  %1203 = vrot.lane.b32.xlu0 %v1202_v10, %s2747_s21 }
 0x250   : > { %1325 = vrot.lane.b32.xlu2 %v1178_v60, %s2748_s2 }
 0x257   : > { %v1180_v11 = vpop.permute.xlu0 %1179  ;;  %1323 = vrot.lane.b32.xlu0 %v1173_v5, %s2748_s2 }
 0x258   : > { %1346 = vrot.lane.b32.xlu2 %v1202_v10, %s2748_s2  ;;  %v1185_v12 = vsel %vm1030_vm11, %v1180_v11, 0  ;;  %s3368_s2 = sld [smem:[#allocation17_spill]] }
 0x259   : > { %v1209_v13 = vpop.permute.xlu1 %1208  ;;  %1194 = vmatpush.bf16.xpose.msrb.mxu3 %v1185_v12 }
 0x25a   : > { %v1214_v14 = vsel %vm1030_vm11, %v1209_v13, 0 }
 0x25b   : > { %1223 = vmatpush.bf16.xpose.msra.mxu0 %v1214_v14 }
 0x25f   : > { %1488 = vrot.lane.b32.xlu0 %v1207_v63, %s2749_s25 }
 0x260   : > { %1463 = vrot.lane.b32.xlu2 %v1173_v5, %s2749_s25  ;;  %s734_s25 = scalar_lea.vmem %s3368_s2, %s2919_s24 }
 0x261   : > { %v1349_v15 = vpop.permute.xlu1 %1348 }
 0x262   : > { %v1354_v16 = vsel %vm1030_vm11, %v1349_v15, 0 }
 0x263   : > { %1363 = vmatpush.bf16.xpose.msrb.mxu0 %v1354_v16 }
 0x269   : > { %v1466_v18 = vpop.permute.xlu1 %1465 }
 0x26a   : > { %v1471_v23 = vsel %vm1030_vm11, %v1466_v18, 0 }
 0x2a1   : > { %v1175_v17 = vpop.permute.xlu2 %1174 }
 0x2a2   : > { %2410 = vmatmul.msk.bf16.vlgmr.msrb.gmra.mxu3 %vm1030_vm11, %v1175_v17 }
 0x2aa   : > { %v1326_v21 = vpop.permute.xlu2 %1325 }
 0x2ab   : > { %v1331_v22 = vsel %vm1030_vm11, %v1326_v21, 0 }
 0x2ac   : > { %1340 = vmatpush.bf16.xpose.msra.mxu3 %v1331_v22 }
 0x2b2   : > { %v1347_v34 = vpop.permute.xlu2 %1346 }
 0x2b4   : > { %1480 = vmatpush.bf16.xpose.msrb.mxu3 %v1471_v23 }
 0x2ba   : > { %v1464_v38 = vpop.permute.xlu2 %1463 }
 0x2c1   : > { %v1204_v24 = vpop.permute.xlu0 %1203  ;;  %v1487_v41 = vpop.permute.xlu1 %1486 }
 0x2c2   : > { %2411 = vmatmul.msk.bf16.vlgmr.msra.gmra.mxu0 %vm1030_vm11, %v1204_v24 }
 0x2c6   : > { %v1046_v25 = vpop.f32.mrf.mxu3 }
 0x2c7   : > { %v1069_v26 = vmul.f32 0.35355338, %v1046_v25 }
 0x2c8   : > { %v1065_v27 = vpop.f32.mrf.mxu0 }
 0x2c9   : > { %v1070_v28 = vmul.f32 0.35355338, %v1065_v27  ;;  %v1324_v29 = vpop.permute.xlu0 %1323  ;;  %v1072_v30 = vsel %vm1071_vm12, %v1069_v26, -inf }
 0x2ca   : > { %1073 = vmax.xlane.f32.xlu2 %v1072_v30  ;;  %2414 = vmatmul.msk.bf16.vlgmr.msra.gmra.mxu3 %vm1030_vm11, %v1324_v29 }
 0x2cb   : > { %v1075_v32 = vsel %vm1071_vm12, %v1070_v28, -inf }
 0x2cc   : > { %1076 = vmax.xlane.f32.xlu0 %v1075_v32 }
 0x2ce   : > { %v1048_v33 = vpop.f32.mrf.mxu3 }
 0x2d0   : > { %v1067_v35 = vpop.f32.mrf.mxu0 }
 0x2d1   : > { %v1489_v36 = vpop.permute.xlu0 %1488 }
 0x2d2   : > { %v1494_v37 = vsel %vm1030_vm11, %v1489_v36, 0  ;;  %2415 = vmatmul.msk.bf16.vlgmr.msrb.gmra.mxu0 %vm1030_vm11, %v1347_v34 }
 0x2d3   : > { %1503 = vmatpush.bf16.xpose.msra.mxu0 %v1494_v37 }
 0x2da   : > { %2418 = vmatmul.msk.bf16.vlgmr.msrb.gmra.mxu3 %vm1030_vm11, %v1464_v38 }
 0x2e0   : > { %1017 = vrot.lane.b32.xlu0 %v1015_v39, %s2750_s26  ;;  %s2758_s26 = smov 24  }
 0x2e2   : > { %2419 = vmatmul.msk.bf16.vlgmr.msra.gmra.mxu0 %vm1030_vm11, %v1487_v41 }
 0x325   : > { %v1196_v42 = vpop.f32.mrf.mxu3 }
 0x326   : > { %v1229_v43 = vmul.f32 0.35355338, %v1196_v42 }
 0x328   : > { %v1231_v44 = vsel %vm1071_vm12, %v1229_v43, -inf }
 0x329   : > { %1232 = vmax.xlane.f32.xlu2 %v1231_v44 }
 0x32d   : > { %v1198_v45 = vpop.f32.mrf.mxu3 }
 0x33d   : > { %v1074_v47 = vpop.xlane.xlu2 %1073 }
 0x33e   : > { %v1078_v48 = vsub.f32 %v1069_v26, %v1074_v47 }
 0x33f   : > { %v1225_v49 = vpop.f32.mrf.mxu0  ;;  %v1077_v50 = vpop.xlane.xlu0 %1076 }
 0x340   : > { %v1080_v52 = vmul.f32 1.442695, %v1078_v48  ;;  %v1230_v53 = vmul.f32 0.35355338, %v1225_v49  ;;  %v1079_v54 = vsub.f32 %v1070_v28, %v1077_v50 }
 0x342   : > { %2584 = vpow2.f32 %v1080_v52  ;;  %v1082_v19 = vmul.f32 1.442695, %v1079_v54  ;;  %v1234_v55 = vsel %vm1071_vm12, %v1230_v53, -inf }
 0x343   : > { %1235 = vmax.xlane.f32.xlu1 %v1234_v55 }
 0x344   : > { %2586 = vpow2.f32 %v1082_v19 }
 0x347   : > { %v1227_v56 = vpop.f32.mrf.mxu0 }
 0x348   : > { %v3022_v51 = vpop.eup %2584 }
 0x349   : > { %v1084_v57 = vsel %vm1071_vm12, %v3022_v51, 0.0 }
 0x34a   : > { %v3026_v58 = vpop.eup %2586 }
 0x34b   : > { %1085 = vadd.xlane.f32.xlu1 %v1084_v57  ;;  %v1087_v59 = vsel %vm1071_vm12, %v3026_v58, 0.0 }
 0x34c   : > { %1088 = vadd.xlane.f32.xlu2 %v1087_v59 }
 0x34d   : > { %v1342_v60 = vpop.f32.mrf.mxu3 }
 0x34e   : > { %v3030_v61 = vmul.f32 0.35355338, %v1342_v60 }
 0x34f   : > { %v1365_v62 = vpop.f32.mrf.mxu0 }
 0x350   : > { %v1370_v63 = vmul.f32 0.35355338, %v1365_v62  ;;  %v1371_v1 = vsel %vm1071_vm12, %v3030_v61, -inf }
 0x352   : > { %v1374_v0 = vsel %vm1071_vm12, %v1370_v63, -inf  ;;  %v1018_v4 = vpop.permute.xlu0 %1017 }
 0x353   : > { %1375 = vmax.xlane.f32.xlu1 %v1374_v0  ;;  %v1020_v6 = vadd.f32 %v1018_v4, %v2997_v46 }
 0x354   : > { %1372 = vmax.xlane.f32.xlu2 %v1371_v1 }
 0x355   : > { %v1344_v2 = vpop.f32.mrf.mxu3  ;;  %v1028_v11 = vpack.c.bf16 %v1020_v6, %v1020_v6  ;;  %v1022_v15 = vrot.slane %v1020_v6, 4 }
 0x357   : > { %v1367_v3 = vpop.f32.mrf.mxu0  ;;  %v1123_v14 = vunpack.c.l.b16 %v1028_v11  ;;  %v1029_v46 = vpack.c.bf16 %v1022_v15, %v1022_v15 }
 0x359   : > { %v3044_v17 = vpack.c.b16 %v1123_v14, %v1123_v14  ;;  %v1148_v18 = vunpack.c.l.b16 %v1029_v46 }
 0x35b   : > { %v3047_v21 = vpack.c.b16 %v1148_v18, %v1148_v18 }
 0x35d   : > { %v1482_v5 = vpop.f32.mrf.mxu3 }
 0x35e   : > { %v3036_v7 = vmul.f32 0.35355338, %v1482_v5 }
 0x35f   : > { %v1505_v8 = vpop.f32.mrf.mxu0 }
 0x360   : > { %v3038_v9 = vmul.f32 0.35355338, %v1505_v8  ;;  %v1511_v10 = vsel %vm1071_vm12, %v3036_v7, -inf }
 0x361   : > { %1512 = vmax.xlane.f32.xlu0 %v1511_v10 }
 0x362   : > { %v1514_v12 = vsel %vm1071_vm12, %v3038_v9, -inf }
 0x363   : > { %1515 = vmax.xlane.f32.xlu1 %v1514_v12 }
 0x365   : > { %v1484_v13 = vpop.f32.mrf.mxu3 }
 0x367   : > { %v1507_v16 = vpop.f32.mrf.mxu0 }
 0x36c   : > { %1125 = vrot.lane.b32.xlu2 %v3044_v17, %s2751_s22 }
 0x375   : > { %1302 = vrot.lane.b32.xlu0 %v3047_v21, %s2752_s23 }
 0x37c   : > { %1150 = vrot.lane.b32.xlu1 %v3047_v21, %s2751_s22 }
 0x37d   : > { %1281 = vrot.lane.b32.xlu0 %v3044_v17, %s2752_s23  ;;  %s3141_s23 = scalar_lea.vmem %s3369_s5, %s3384_s29 }
 0x39c   : > { %v1233_v22 = vpop.xlane.xlu2 %1232 }
 0x39d   : > { %v1237_v23 = vsub.f32 %v1229_v43, %v1233_v22 }
 0x39f   : > { %v1239_v24 = vmul.f32 1.442695, %v1237_v23 }
 0x3a1   : > { %2588 = vpow2.f32 %v1239_v24 }
 0x3a7   : > { %v3052_v25 = vpop.eup %2588 }
 0x3a8   : > { %v1243_v26 = vsel %vm1071_vm12, %v3052_v25, 0.0 }
 0x3a9   : > { %1244 = vadd.xlane.f32.xlu2 %v1243_v26 }
 0x3b6   : > { %v1236_v27 = vpop.xlane.xlu1 %1235 }
 0x3b7   : > { %v1238_v28 = vsub.f32 %v1230_v53, %v1236_v27 }
 0x3b9   : > { %v1241_v29 = vmul.f32 1.442695, %v1238_v28 }
 0x3bb   : > { %2590 = vpow2.f32 %v1241_v29 }
 0x3be   : > { %v1086_v30 = vpop.xlane.xlu1 %1085 }
 0x3bf   : > { %2592 = vrcp.f32 %v1086_v30  ;;  %v3056_v32 = vpop.xlane.xlu2 %1088  ;;  %v1101_v43 = vand.u32 2147483648, %v1086_v30  ;;  %v1099_v47 = vand.u32 2147483647, %v1086_v30  ;;  %vm1095_vm14 = vweird.f32 %v1086_v30 }
 0x3c0   : > { %vm1110_vm4 = vweird.f32 %v3056_v32  ;;  %v1114_v13 = vand.u32 2147483647, %v3056_v32 }
 0x3c1   : > { %v3058_v33 = vpop.eup %2590  ;;  %v1102_v50 = vor.u32 1.1754944e-38, %v1101_v43  ;;  %vm1100_vm2 = vcmp.eq.f32.partialorder %v1099_v47, 8.507059e+37 }
 0x3c2   : > { %v1246_v34 = vsel %vm1071_vm12, %v3058_v33, 0.0  ;;  %vm1115_vm6 = vcmp.eq.f32.partialorder %v1114_v13, 8.507059e+37 }
 0x3c3   : > { %1247 = vadd.xlane.f32.xlu2 %v1246_v34 }
 0x3c5   : > { %v2593_v35 = vpop.eup %2592 }
 0x3c6   : > { %v1091_v36 = vmul.f32 %v2593_v35, %v1086_v30  ;;  %v1376_v37 = vpop.xlane.xlu1 %1375  ;;  %vm1096_vm13 = vweird.f32 %v2593_v35 }
 0x3c7   : > { %v1378_v38 = vsub.f32 %v1370_v63, %v1376_v37  ;;  %v1373_v39 = vpop.xlane.xlu2 %1372  ;;  %vm1097_vm15 = vmor %vm1095_vm14, %vm1096_vm13 }
 0x3c8   : > { %v1092_v41 = vsub.f32 1.0, %v1091_v36  ;;  %v1377_v42 = vsub.f32 %v3030_v61, %v1373_v39 }
 0x3c9   : > { %v1381_v44 = vmul.f32 1.442695, %v1378_v38 }
 0x3ca   : > { %v1093_v45 = vmul.f32 %v2593_v35, %v1092_v41  ;;  %v1379_v48 = vmul.f32 1.442695, %v1377_v42 }
 0x3cb   : > { %2594 = vpow2.f32 %v1381_v44 }
 0x3cc   : > { %v1094_v49 = vadd.f32 %v2593_v35, %v1093_v45  ;;  %2596 = vpow2.f32 %v1379_v48 }
 0x3cd   : > { %2598 = vrcp.f32 %v3056_v32 }
 0x3ce   : > { %v1098_v52 = vsel %vm1097_vm15, %v2593_v35, %v1094_v49 }
 0x3cf   : > { %v1126_v53 = vpop.permute.xlu2 %1125  ;;  %v1103_v54 = vsel %vm1100_vm2, %v1102_v50, %v1098_v52 }
 0x3d0   : > { %v1132_v19 = vsel %vm1130_vm1, %v1126_v53, 0  ;;  %v1104_v55 = vmul.f32 %v3022_v51, %v1103_v54 }
 0x3d1   : > { %v3066_v56 = vpop.eup %2594  ;;  %1141 = vmatpush.bf16.msrb.mxu1 %v1132_v19 }
 0x3d2   : > { %v3068_v57 = vpop.eup %2596  ;;  %v1386_v59 = vsel %vm1071_vm12, %v3066_v56, 0.0  ;;  %v1120_v60 = vpack.c.bf16 %v1104_v55, %v1104_v55 }
 0x3d3   : > { %1387 = vadd.xlane.f32.xlu1 %v1386_v59  ;;  %v1383_v61 = vsel %vm1071_vm12, %v3068_v57, 0.0  ;;  %v2599_v62 = vpop.eup %2598 }
 0x3d4   : > { %1384 = vadd.xlane.f32.xlu2 %v1383_v61  ;;  %2408 = vmatmul.msk.bf16.vlgmr.msrb.gmra.mxu1 %vm1071_vm12, %v1120_v60  ;;  %v1513_v63 = vpop.xlane.xlu0 %1512  ;;  %v1106_v1 = vmul.f32 %v2599_v62, %v3056_v32  ;;  %vm1111_vm3 = vweird.f32 %v2599_v62 }
 0x3d5   : > { %v1517_v51 = vsub.f32 %v3036_v7, %v1513_v63  ;;  %vm1112_vm5 = vmor %vm1110_vm4, %vm1111_vm3 }
 0x3d6   : > { %v1516_v0 = vpop.xlane.xlu1 %1515  ;;  %v1107_v5 = vsub.f32 1.0, %v1106_v1 }
 0x3d7   : > { %v1519_v2 = vmul.f32 1.442695, %v1517_v51  ;;  %v1518_v3 = vsub.f32 %v3038_v9, %v1516_v0  ;;  %v1116_v9 = vand.u32 2147483648, %v3056_v32 }
 0x3d8   : > { %v1108_v8 = vmul.f32 %v2599_v62, %v1107_v5 }
 0x3d9   : > { %2600 = vpow2.f32 %v1519_v2  ;;  %v1521_v4 = vmul.f32 1.442695, %v1518_v3  ;;  %v1117_v16 = vor.u32 1.1754944e-38, %v1116_v9 }
 0x3da   : > { %v1109_v12 = vadd.f32 %v2599_v62, %v1108_v8 }
 0x3db   : > { %2602 = vpow2.f32 %v1521_v4 }
 0x3dc   : > { %v1113_v15 = vsel %vm1112_vm5, %v2599_v62, %v1109_v12 }
 0x3dd   : > { %v1118_v46 = vsel %vm1115_vm6, %v1117_v16, %v1113_v15 }
 0x3de   : > { %v1119_v18 = vmul.f32 %v3026_v58, %v1118_v46 }
 0x3df   : > { %v3078_v6 = vpop.eup %2600 }
 0x3e0   : > { %v1523_v10 = vsel %vm1071_vm12, %v3078_v6, 0.0  ;;  %v1121_v28 = vpack.c.bf16 %v1119_v18, %v1119_v18 }
 0x3e1   : > { %v3082_v11 = vpop.eup %2602  ;;  %1524 = vadd.xlane.f32.xlu2 %v1523_v10 }
 0x3e2   : > { %v1526_v7 = vsel %vm1071_vm12, %v3082_v11, 0.0 }
 0x3e3   : > { %1527 = vadd.xlane.f32.xlu0 %v1526_v7 }
 0x3e7   : > { %v1303_v14 = vpop.permute.xlu0 %1302 }
 0x3e8   : > { %v1308_v26 = vsel %vm1130_vm1, %v1303_v14, 0 }
 0x3ec   : > { %1442 = vrot.lane.b32.xlu1 %v3047_v21, %s2753_s27 }
 0x3ee   : > { %v1151_v22 = vpop.permute.xlu1 %1150 }
 0x3ef   : > { %v1282_v23 = vpop.permute.xlu0 %1281  ;;  %v1156_v24 = vsel %vm1130_vm1, %v1151_v22, 0 }
 0x3f0   : > { %v1287_v27 = vsel %vm1130_vm1, %v1282_v23, 0  ;;  %1165 = vmatpush.bf16.msrb.mxu2 %v1156_v24 }
 0x3f1   : > { %1296 = vmatpush.bf16.msra.mxu1 %v1287_v27 }
 0x3f3   : > { %2409 = vmatmul.msk.bf16.vlgmr.msrb.gmra.mxu2 %vm1071_vm12, %v1121_v28 }
 0x3f4   : > { %1317 = vmatpush.bf16.msra.mxu2 %v1308_v26  ;;  %1582 = vrot.lane.b32.xlu1 %v3047_v21, %s2754_s28 }
 0x3f9   : > { %1421 = vrot.lane.b32.xlu2 %v3044_v17, %s2753_s27 }
 0x3fc   : > { %1561 = vrot.lane.b32.xlu1 %v3044_v17, %s2754_s28 }
 0x41c   : > { %v1245_v58 = vpop.xlane.xlu2 %1244 }
 0x41d   : > { %2604 = vrcp.f32 %v1245_v58  ;;  %v1260_v34 = vand.u32 2147483648, %v1245_v58  ;;  %v1258_v36 = vand.u32 2147483647, %v1245_v58  ;;  %vm1254_vm8 = vweird.f32 %v1245_v58 }
 0x41f   : > { %v1261_v38 = vor.u32 1.1754944e-38, %v1260_v34  ;;  %vm1259_vm10 = vcmp.eq.f32.partialorder %v1258_v36, 8.507059e+37 }
 0x423   : > { %v2605_v29 = vpop.eup %2604 }
 0x424   : > { %v1250_v30 = vmul.f32 %v2605_v29, %v1245_v58  ;;  %vm1255_vm7 = vweird.f32 %v2605_v29 }
 0x425   : > { %vm1256_vm9 = vmor %vm1254_vm8, %vm1255_vm7 }
 0x426   : > { %v1251_v32 = vsub.f32 1.0, %v1250_v30 }
 0x428   : > { %v1252_v35 = vmul.f32 %v2605_v29, %v1251_v32 }
 0x42a   : > { %v1253_v37 = vadd.f32 %v2605_v29, %v1252_v35 }
 0x42c   : > { %v1257_v39 = vsel %vm1256_vm9, %v2605_v29, %v1253_v37 }
 0x42d   : > { %v1262_v21 = vsel %vm1259_vm10, %v1261_v38, %v1257_v39 }
 0x42e   : > { %v1263_v41 = vmul.f32 %v3052_v25, %v1262_v21 }
 0x430   : > { %v1279_v42 = vpack.c.bf16 %v1263_v41, %v1263_v41 }
 0x432   : > { %2412 = vmatmul.msk.bf16.vlgmr.msra.gmra.mxu1 %vm1071_vm12, %v1279_v42 }
 0x436   : > { %v1248_v17 = vpop.xlane.xlu2 %1247 }
 0x437   : > { %2606 = vrcp.f32 %v1248_v17  ;;  %v1275_v47 = vand.u32 2147483648, %v1248_v17  ;;  %v1273_v49 = vand.u32 2147483647, %v1248_v17  ;;  %vm1269_vm14 = vweird.f32 %v1248_v17 }
 0x439   : > { %v1276_v52 = vor.u32 1.1754944e-38, %v1275_v47  ;;  %vm1274_vm2 = vcmp.eq.f32.partialorder %v1273_v49, 8.507059e+37 }
 0x43d   : > { %v2607_v43 = vpop.eup %2606 }
 0x43e   : > { %v1265_v44 = vmul.f32 %v2607_v43, %v1248_v17  ;;  %vm1270_vm13 = vweird.f32 %v2607_v43 }
 0x43f   : > { %vm1271_vm15 = vmor %vm1269_vm14, %vm1270_vm13 }
 0x440   : > { %v1266_v45 = vsub.f32 1.0, %v1265_v44 }
 0x442   : > { %v1267_v48 = vmul.f32 %v2607_v43, %v1266_v45 }
 0x444   : > { %v1268_v50 = vadd.f32 %v2607_v43, %v1267_v48 }
 0x446   : > { %v1272_v53 = vsel %vm1271_vm15, %v2607_v43, %v1268_v50  ;;  %v1388_v54 = vpop.xlane.xlu1 %1387 }
 0x447   : > { %v1277_v25 = vsel %vm1274_vm2, %v1276_v52, %v1272_v53  ;;  %2608 = vrcp.f32 %v1388_v54  ;;  %v1385_v19 = vpop.xlane.xlu2 %1384  ;;  %vm1409_vm5 = vweird.f32 %v1388_v54  ;;  %v1413_v12 = vand.u32 2147483647, %v1388_v54 }
 0x448   : > { %v1278_v55 = vmul.f32 %v3058_v33, %v1277_v25  ;;  %2610 = vrcp.f32 %v1385_v19  ;;  %v1400_v3 = vand.u32 2147483648, %v1385_v19  ;;  %v1398_v5 = vand.u32 2147483647, %v1385_v19 }
 0x449   : > { %v1415_v33 = vand.u32 2147483648, %v1388_v54  ;;  %vm1394_vm7 = vweird.f32 %v1385_v19  ;;  %vm1414_vm10 = vcmp.eq.f32.partialorder %v1413_v12, 8.507059e+37  ;;  %v1636_v12 = vld [vmem:[%s734_s25 + $0x8] sm:$0xff] }
 0x44a   : > { %v1280_v59 = vpack.c.bf16 %v1278_v55, %v1278_v55  ;;  %v1401_v13 = vor.u32 1.1754944e-38, %v1400_v3  ;;  %vm1399_vm9 = vcmp.eq.f32.partialorder %v1398_v5, 8.507059e+37 }
 0x44b   : > { %v1416_v46 = vor.u32 1.1754944e-38, %v1415_v33 }
 0x44c   : > { %2413 = vmatmul.msk.bf16.vlgmr.msra.gmra.mxu2 %vm1071_vm12, %v1280_v59 }
 0x44d   : > { %v2609_v60 = vpop.eup %2608 }
 0x44e   : > { %v2611_v61 = vpop.eup %2610  ;;  %v1405_v62 = vmul.f32 %v2609_v60, %v1388_v54  ;;  %vm1410_vm3 = vweird.f32 %v2609_v60 }
 0x44f   : > { %v1390_v63 = vmul.f32 %v2611_v61, %v1385_v19  ;;  %vm1395_vm4 = vweird.f32 %v2611_v61  ;;  %vm3104_vm6 = vmor %vm1409_vm5, %vm1410_vm3 }
 0x450   : > { %v1406_v51 = vsub.f32 1.0, %v1405_v62  ;;  %vm1396_vm8 = vmor %vm1394_vm7, %vm1395_vm4 }
 0x451   : > { %v1391_v0 = vsub.f32 1.0, %v1390_v63  ;;  %v3102_v1 = vpop.f32.mrf.mxu1 }
 0x452   : > { %v1407_v2 = vmul.f32 %v2609_v60, %v1406_v51 }
 0x453   : > { %v1392_v4 = vmul.f32 %v2611_v61, %v1391_v0  ;;  %v2756_v0 = vmov 0  }
 0x454   : > { %v1408_v8 = vadd.f32 %v2609_v60, %v1407_v2  ;;  %v1525_v10 = vpop.xlane.xlu2 %1524  ;;  %2568 = vset.pattern.permute.xlu1 %v2756_v0  ;;  %2569 = vset.pattern.permute.xlu2 %v2756_v0 }
 0x455   : > { %v1393_v9 = vadd.f32 %v2611_v61, %v1392_v4  ;;  %2612 = vrcp.f32 %v1525_v10  ;;  %vm1534_vm15 = vweird.f32 %v1525_v10  ;;  %v1538_v43 = vand.u32 2147483647, %v1525_v10  ;;  %2570 = vset.pattern.permute.xlu0 %v2756_v0 }
 0x456   : > { %v1528_v14 = vpop.xlane.xlu0 %1527  ;;  %v1412_v15 = vsel %vm3104_vm6, %v2609_v60, %v1408_v8  ;;  %v1635_v8 = vld [vmem:[%s734_s25] sm:$0xff]  ;;  %s739_s25 = scalar_lea.vmem %s3370_s4, %s3384_s29 }
 0x457   : > { %v1397_v16 = vsel %vm1396_vm8, %v2611_v61, %v1393_v9  ;;  %2614 = vrcp.f32 %v1528_v14  ;;  %v1417_v23 = vsel %vm1414_vm10, %v1416_v46, %v1412_v15  ;;  %v1555_v17 = vand.u32 2147483648, %v1528_v14 }
 0x458   : > { %v1402_v18 = vsel %vm1399_vm9, %v1401_v13, %v1397_v16  ;;  %v1418_v29 = vmul.f32 %v3066_v56, %v1417_v23  ;;  %v1540_v56 = vand.u32 2147483648, %v1525_v10  ;;  %vm1549_vm3 = vweird.f32 %v1528_v14 }
 0x459   : > { %v1145_v22 = vpop.f32.mrf.mxu1  ;;  %v1403_v26 = vmul.f32 %v3068_v57, %v1402_v18  ;;  %v1553_v44 = vand.u32 2147483647, %v1528_v14  ;;  %v1556_v52 = vor.u32 1.1754944e-38, %v1555_v17  ;;  %vm1539_vm5 = vcmp.eq.f32.partialorder %v1538_v43, 8.507059e+37 }
 0x45a   : > { %v1420_v57 = vpack.c.bf16 %v1418_v29, %v1418_v29  ;;  %v1541_v50 = vor.u32 1.1754944e-38, %v1540_v56 }
 0x45b   : > { %v2613_v24 = vpop.eup %2612  ;;  %v1419_v37 = vpack.c.bf16 %v1403_v26, %v1403_v26  ;;  %vm1554_vm6 = vcmp.eq.f32.partialorder %v1553_v44, 8.507059e+37 }
 0x45c   : > { %v1530_v27 = vmul.f32 %v2613_v24, %v1525_v10  ;;  %v1422_v28 = vpop.permute.xlu2 %1421  ;;  %vm1535_vm13 = vweird.f32 %v2613_v24 }
 0x45d   : > { %v2615_v58 = vpop.eup %2614  ;;  %v1427_v30 = vsel %vm1130_vm1, %v1422_v28, 0  ;;  %vm1536_vm2 = vmor %vm1534_vm15, %vm1535_vm13 }
 0x45e   : > { %v1531_v32 = vsub.f32 1.0, %v1530_v27  ;;  %v1545_v34 = vmul.f32 %v2615_v58, %v1528_v14  ;;  %v1443_v35 = vpop.permute.xlu1 %1442  ;;  %1436 = vmatpush.bf16.msrb.mxu1 %v1427_v30  ;;  %vm1550_vm14 = vweird.f32 %v2615_v58 }
 0x45f   : > { %v1448_v36 = vsel %vm1130_vm1, %v1443_v35, 0  ;;  %vm1551_vm4 = vmor %vm1549_vm3, %vm1550_vm14 }
 0x460   : > { %v1532_v38 = vmul.f32 %v2613_v24, %v1531_v32  ;;  %v1546_v39 = vsub.f32 1.0, %v1545_v34  ;;  %1457 = vmatpush.bf16.msrb.mxu2 %v1448_v36 }
 0x461   : > { %2416 = vmatmul.msk.bf16.vlgmr.msrb.gmra.mxu1 %vm1071_vm12, %v1419_v37 }
 0x462   : > { %v1547_v21 = vmul.f32 %v2615_v58, %v1546_v39  ;;  %v1533_v41 = vadd.f32 %v2613_v24, %v1532_v38 }
 0x463   : > { %2417 = vmatmul.msk.bf16.vlgmr.msrb.gmra.mxu2 %vm1071_vm12, %v1420_v57 }
 0x464   : > { %v1548_v42 = vadd.f32 %v2615_v58, %v1547_v21  ;;  %v1537_v47 = vsel %vm1536_vm2, %v2613_v24, %v1533_v41 }
 0x465   : > { %v1542_v53 = vsel %vm1539_vm5, %v1541_v50, %v1537_v47  ;;  %v2494_v47 = vld [vmem:[%s3330_s13 + $0x8] sm:$0xff] }
 0x466   : > { %v1583_v45 = vpop.permute.xlu1 %1582  ;;  %v1552_v48 = vsel %vm1551_vm4, %v2615_v58, %v1548_v42  ;;  %v1543_v25 = vmul.f32 %v3078_v6, %v1542_v53  ;;  %1788 = vmatpush.bf16.msra.mxu3 %v2494_v47 }
 0x467   : > { %v1588_v49 = vsel %vm1130_vm1, %v1583_v45, 0  ;;  %v1557_v54 = vsel %vm1554_vm6, %v1556_v52, %v1552_v48  ;;  %v2493_v48 = vld [vmem:[%s3330_s13] sm:$0xff] }
 0x468   : > { %1597 = vmatpush.bf16.msra.mxu2 %v1588_v49  ;;  %v1558_v19 = vmul.f32 %v3082_v11, %v1557_v54  ;;  %v1559_v60 = vpack.c.bf16 %v1543_v25, %v1543_v25 }
 0x46a   : > { %v1560_v61 = vpack.c.bf16 %v1558_v19, %v1558_v19  ;;  %1789 = vmatpush.bf16.msra.mxu3 %v2493_v48 }
 0x46e   : > { %v1562_v55 = vpop.permute.xlu1 %1561 }
 0x46f   : > { %v1567_v59 = vsel %vm1130_vm1, %v1562_v55, 0  ;;  %vm1632_vm1 = vcmask 195584   ;;  %v3158_v55 = vld [vmem:[%s3325_s8 + $0x8] sm:$0xff] }
 0x470   : > { %1576 = vmatpush.bf16.msra.mxu1 %v1567_v59  ;;  %v1649_v59 = vld [vmem:[%s739_s25] sm:$0x1] }
 0x473   : > { %2420 = vmatmul.msk.bf16.vlgmr.msra.gmra.mxu1 %vm1071_vm12, %v1559_v60  ;;  %2421 = vmatmul.msk.bf16.vlgmr.msra.gmra.mxu2 %vm1071_vm12, %v1560_v61  ;;  %vm1629_vm12 = vcmask 130048  }
 0x476   : > { %v1167_v62 = vpop.f32.mrf.mxu2 }
 0x47e   : > { %v1169_v63 = vpop.f32.mrf.mxu2 }
 0x47f   : > { %v1697_v63 = vperm.slane %v3158_v55, 0 }
 0x4af   : > { %v1298_v51 = vpop.f32.mrf.mxu1 }
 0x4b0   : > { %1605 = vrot.lane.b32.xlu0 %v1298_v51, %s3345_s19  ;;  %v1703_v51 = vadd.f32 1.0, %v1649_v59  ;;  %v2495_v59 = vld [vmem:[%s3331_s14] sm:$0xff] }
 0x4b7   : > { %v1300_v6 = vpop.f32.mrf.mxu1 }
 0x4cf   : > { %v1319_v11 = vpop.f32.mrf.mxu2 }
 0x4d0   : > { %1607 = vrot.lane.b32.xlu1 %v1319_v11, %s3345_s19  ;;  %v1700_v11 = vperm.slane %v3158_v55, 1 }
 0x4d7   : > { %v1321_v2 = vpop.f32.mrf.mxu2 }
 0x4de   : > { %v1438_v3 = vpop.f32.mrf.mxu1 }
 0x4df   : > { %1613 = vrot.lane.b32.xlu2 %v1438_v3, %s2757_s0 }
 0x4e6   : > { %v1440_v4 = vpop.f32.mrf.mxu1  ;;  %v1459_v5 = vpop.f32.mrf.mxu2 }
 0x4e7   : > { %1615 = vrot.lane.b32.xlu1 %v1459_v5, %s2757_s0  ;;  %v1707_v4 = vperm.slane %v1703_v51, 0 }
 0x4ee   : > { %v1461_v33 = vpop.f32.mrf.mxu2 }
 0x4ef   : > { %1639 = vperm.xlu1 %2568, %v1635_v8  }
 0x4f0   : > { %v1578_v10 = vpop.f32.mrf.mxu1 }
 0x4f1   : > { %1621 = vrot.lane.b32.xlu2 %v1578_v10, %s2758_s26  ;;  %v1650_v10 = vld [vmem:[%s739_s25 + $0x1] sm:$0x1] }
 0x4f6   : > { %v1599_v7 = vpop.f32.mrf.mxu2 }
 0x4f7   : > { %1623 = vrot.lane.b32.xlu0 %v1599_v7, %s2758_s26  ;;  %s2505_s26 = sshll.u32 %s2882_s1, 4 }
 0x4f8   : > { %v1580_v9 = vpop.f32.mrf.mxu1 }
 0x4f9   : > { %1644 = vperm.xlu2 %2569, %v1636_v12   ;;  %v2571_v12 = vld [vmem:[%s3141_s23] ss:$0 sm:$0xff] }
 0x4fe   : > { %v1601_v13 = vpop.f32.mrf.mxu2 }
 0x522   : > { %v1606_v46 = vpop.permute.xlu0 %1605 }
 0x523   : > { %v1627_v22 = vsel %vm1030_vm11, %v3102_v1, %v1606_v46 }
 0x539   : > { %v1614_v15 = vpop.permute.xlu2 %1613 }
 0x53a   : > { %v1630_v23 = vsel %vm1629_vm12, %v1627_v22, %v1614_v15 }
 0x542   : > { %v1608_v14 = vpop.permute.xlu1 %1607 }
 0x543   : > { %v1628_v58 = vsel %vm1030_vm11, %v1167_v62, %v1608_v14  ;;  %v1704_v14 = vadd.f32 1.0, %v1650_v10 }
 0x545   : > { %v1708_v22 = vperm.slane %v1704_v14, 0 }
 0x54b   : > { %v1622_v18 = vpop.permute.xlu2 %1621 }
 0x54c   : > { %v1633_v26 = vsel %vm1632_vm1, %v1630_v23, %v1622_v18 }
 0x553   : > { %v1645_v29 = vpop.permute.xlu2 %1644 }
 0x559   : > { %v1616_v16 = vpop.permute.xlu1 %1615 }
 0x55a   : > { %v1631_v30 = vsel %vm1629_vm12, %v1628_v58, %v1616_v16 }
 0x561   : > { %v1640_v24 = vpop.permute.xlu1 %1639 }
 0x562   : > { %v1647_v27 = vmul.f32 %v1640_v24, %v1633_v26  ;;  %v2572_v26 = vld [vmem:[%s3141_s23 + $0x1] ss:$0 sm:$0xff]  ;;  %s749_s23 = scalar_lea.vmem %s3323_s6, %s3384_s29 }
 0x564   : > { %v1653_v28 = vsel %vm785_vm0, %v1647_v27, 0.0 }
 0x565   : > { %1654 = vadd.xlane.f32.xlu0 %v1653_v28 }
 0x569   : > { %v1624_v32 = vpop.permute.xlu0 %1623 }
 0x56a   : > { %v1634_v34 = vsel %vm1632_vm1, %v1631_v30, %v1624_v32 }
 0x56b   : > { %v1648_v35 = vmul.f32 %v1645_v29, %v1634_v34 }
 0x56d   : > { %v1656_v36 = vsel %vm785_vm0, %v1648_v35, 0.0 }
 0x56e   : > { %1657 = vadd.xlane.f32.xlu1 %v1656_v36 }
 0x5d8   : > { %v1655_v37 = vpop.xlane.xlu0 %1654 }
 0x5d9   : > { %v1659_v1 = vmul.f32 %v1655_v37, %v2940_v20 }
 0x5db   : > { %v1661_v38 = vsub.f32 %v1647_v27, %v1659_v1 }
 0x5dd   : > { %v1663_v39 = vmul.f32 %v1661_v38, %v1661_v38 }
 0x5df   : > { %v1665_v57 = vsel %vm785_vm0, %v1663_v39, 0.0 }
 0x5e0   : > { %1666 = vadd.xlane.f32.xlu2 %v1665_v57 }
 0x5e1   : > { %v1658_v21 = vpop.xlane.xlu1 %1657 }
 0x5e2   : > { %v1660_v41 = vmul.f32 %v1658_v21, %v2940_v20 }
 0x5e4   : > { %v1662_v56 = vsub.f32 %v1648_v35, %v1660_v41 }
 0x5e6   : > { %v1664_v42 = vmul.f32 %v1662_v56, %v1662_v56 }
 0x5e8   : > { %v1668_v17 = vsel %vm785_vm0, %v1664_v42, 0.0 }
 0x5e9   : > { %1669 = vadd.xlane.f32.xlu0 %v1668_v17 }
 0x653   : > { %v1667_v43 = vpop.xlane.xlu2 %1666 }
 0x654   : > { %v1671_v44 = vmul.f32 %v1667_v43, %v2940_v20 }
 0x656   : > { %v1673_v45 = vadd.f32 1e-05, %v1671_v44 }
 0x658   : > { %2616 = vrsqrt.f32 %v1673_v45  ;;  %vm1681_vm7 = vweird.f32 %v1673_v45 }
 0x65c   : > { %v1670_v49 = vpop.xlane.xlu0 %1669 }
 0x65d   : > { %v1672_v50 = vmul.f32 %v1670_v49, %v2940_v20 }
 0x65e   : > { %v2617_v52 = vpop.eup %2616 }
 0x65f   : > { %v1676_v53 = vmul.f32 %v2617_v52, %v1673_v45  ;;  %v1674_v54 = vadd.f32 1e-05, %v1672_v50  ;;  %vm1682_vm11 = vweird.f32 %v2617_v52 }
 0x660   : > { %vm1683_vm8 = vmor %vm1681_vm7, %vm1682_vm11 }
 0x661   : > { %v1677_v25 = vmul.f32 %v2617_v52, %v1676_v53  ;;  %2618 = vrsqrt.f32 %v1674_v54  ;;  %vm1691_vm10 = vweird.f32 %v1674_v54 }
 0x663   : > { %v1678_v19 = vmul.f32 0.5, %v1677_v25 }
 0x665   : > { %v1679_v60 = vsub.f32 1.5, %v1678_v19  ;;  %v2496_v19 = vld [vmem:[%s3331_s14 + $0x8] sm:$0xff] }
 0x666   : > { %1828 = vmatpush.bf16.msrb.mxu0 %v2496_v19 }
 0x667   : > { %v2619_v61 = vpop.eup %2618  ;;  %v1680_v62 = vmul.f32 %v2617_v52, %v1679_v60 }
 0x668   : > { %v1686_v6 = vmul.f32 %v2619_v61, %v1674_v54  ;;  %vm1692_vm9 = vweird.f32 %v2619_v61 }
 0x669   : > { %v1684_v0 = vsel %vm1683_vm8, %v2617_v52, %v1680_v62  ;;  %vm1693_vm13 = vmor %vm1691_vm10, %vm1692_vm9 }
 0x66a   : > { %v1695_v2 = vmul.f32 %v1684_v0, %v1661_v38  ;;  %v1687_v3 = vmul.f32 %v2619_v61, %v1686_v6  ;;  %1829 = vmatpush.bf16.msrb.mxu0 %v2495_v59 }
 0x66c   : > { %v1698_v5 = vmul.f32 %v1697_v63, %v1695_v2  ;;  %v1688_v8 = vmul.f32 0.5, %v1687_v3  ;;  %v2573_v2 = vld [vmem:[%s3326_s9] ss:$0 sm:$0xff] }
 0x66e   : > { %v1701_v33 = vadd.f32 %v1700_v11, %v1698_v5  ;;  %v1689_v7 = vsub.f32 1.5, %v1688_v8 }
 0x670   : > { %v1711_v9 = vmul.f32 %v1707_v4, %v1701_v33  ;;  %v1690_v13 = vmul.f32 %v2619_v61, %v1689_v7 }
 0x672   : > { %v1694_v15 = vsel %vm1693_vm13, %v2619_v61, %v1690_v13  ;;  %v1719_v16 = vadd.f32 %v2571_v12, %v1711_v9  ;;  %v1766_v61 = vperm.slane %v3158_v55, 2 }
 0x673   : > { %v1696_v46 = vmul.f32 %v1694_v15, %v1662_v56 }
 0x674   : > { %v2422_v18 = vmul.f32 -1.442695, %v1719_v16 }
 0x675   : > { %v1699_v23 = vmul.f32 %v1697_v63, %v1696_v46 }
 0x676   : > { %2620 = vpow2.f32 %v2422_v18 }
 0x677   : > { %v1702_v24 = vadd.f32 %v1700_v11, %v1699_v23 }
 0x679   : > { %v1712_v27 = vmul.f32 %v1708_v22, %v1702_v24  ;;  %v2499_v24 = vld [vmem:[%s3332_s15 + $0x10] sm:$0xff] }
 0x67b   : > { %v1720_v28 = vadd.f32 %v2572_v26, %v1712_v27 }
 0x67c   : > { %v2621_v58 = vpop.eup %2620 }
 0x67d   : > { %v2423_v29 = vmul.f32 -1.442695, %v1720_v28  ;;  %v1727_v30 = vadd.f32 1.0, %v2621_v58 }
 0x67f   : > { %2622 = vpow2.f32 %v2423_v29  ;;  %v1740_v21 = vand.u32 2147483648, %v1727_v30  ;;  %vm1734_vm15 = vweird.f32 %v1727_v30  ;;  %v1738_v41 = vand.u32 2147483647, %v1727_v30 }
 0x680   : > { %2624 = vrcp.f32 %v1727_v30 }
 0x681   : > { %v1741_v45 = vor.u32 1.1754944e-38, %v1740_v21  ;;  %vm1739_vm4 = vcmp.eq.f32.partialorder %v1738_v41, 8.507059e+37 }
 0x685   : > { %v2623_v32 = vpop.eup %2622 }
 0x686   : > { %v2625_v34 = vpop.eup %2624  ;;  %v1728_v35 = vadd.f32 1.0, %v2623_v32  ;;  %v2498_v32 = vld [vmem:[%s3332_s15 + $0x8] sm:$0xff] }
 0x687   : > { %v1730_v36 = vmul.f32 %v2625_v34, %v1727_v30  ;;  %vm1735_vm14 = vweird.f32 %v2625_v34 }
 0x688   : > { %2626 = vrcp.f32 %v1728_v35  ;;  %vm1736_vm2 = vmor %vm1734_vm15, %vm1735_vm14  ;;  %v1755_v42 = vand.u32 2147483648, %v1728_v35  ;;  %v1753_v44 = vand.u32 2147483647, %v1728_v35  ;;  %vm1749_vm5 = vweird.f32 %v1728_v35 }
 0x689   : > { %v1731_v37 = vsub.f32 1.0, %v1730_v36 }
 0x68a   : > { %v1756_v49 = vor.u32 1.1754944e-38, %v1755_v42  ;;  %vm1754_vm12 = vcmp.eq.f32.partialorder %v1753_v44, 8.507059e+37 }
 0x68b   : > { %v1732_v1 = vmul.f32 %v2625_v34, %v1731_v37 }
 0x68d   : > { %v1733_v39 = vadd.f32 %v2625_v34, %v1732_v1 }
 0x68e   : > { %v2627_v38 = vpop.eup %2626 }
 0x68f   : > { %v1745_v57 = vmul.f32 %v2627_v38, %v1728_v35  ;;  %v1737_v17 = vsel %vm1736_vm2, %v2625_v34, %v1733_v39  ;;  %vm1750_vm3 = vweird.f32 %v2627_v38 }
 0x690   : > { %v1742_v48 = vsel %vm1739_vm4, %v1741_v45, %v1737_v17  ;;  %vm1751_vm6 = vmor %vm1749_vm5, %vm1750_vm3  ;;  %vm1950_vm3 = vcmask 523264  }
 0x691   : > { %v1746_v56 = vsub.f32 1.0, %v1745_v57  ;;  %v1759_v53 = vmul.f32 %v1742_v48, %v1719_v16  ;;  %v2500_v16 = vld [vmem:[%s3332_s15 + $0x18] sm:$0xff]  ;;  %v2497_v57 = vld [vmem:[%s3332_s15] sm:$0xff] }
 0x692   : > { %1958 = vmatpush.bf16.msrb.mxu1 %v2500_v16 }
 0x693   : > { %v1747_v43 = vmul.f32 %v2627_v38, %v1746_v56 }
 0x695   : > { %v1748_v47 = vadd.f32 %v2627_v38, %v1747_v43 }
 0x696   : > { %1959 = vmatpush.bf16.msrb.mxu1 %v2499_v24 }
 0x697   : > { %v1752_v50 = vsel %vm1751_vm6, %v2627_v38, %v1748_v47 }
 0x698   : > { %v1757_v52 = vsel %vm1754_vm12, %v1756_v49, %v1752_v50 }
 0x699   : > { %v1760_v54 = vmul.f32 %v1757_v52, %v1720_v28 }
 0x69a   : > { %1960 = vmatpush.bf16.msrb.mxu1 %v2498_v32 }
 0x69b   : > { %v1761_v25 = vpack.c.bf16 %v1760_v54, %v1759_v53 }
 0x69d   : > { %2432 = vmatmul.msk.bf16.vlgmr.msra.gmra.mxu3 %vm785_vm0, %v1761_v25 }
 0x69e   : > { %1961 = vmatpush.bf16.msrb.mxu1 %v2497_v57 }
 0x720   : > { %v1791_v60 = vpop.f32.mrf.mxu3 }
 0x721   : > { %v1792_v62 = vadd.f32 %v1791_v60, %v1766_v61 }
 0x723   : > { %v3173_v6 = vadd.f32 %v1792_v62, %v2950_v31 }
 0x728   : > { %v1793_v63 = vpop.f32.mrf.mxu3 }
 0x729   : > { %v1794_v51 = vadd.f32 %v1793_v63, %v1766_v61 }
 0x72b   : > { %v3176_v0 = vadd.f32 %v1794_v51, %v2954_v40 }
 0x72d   : > { %v1798_v11 = vpack.c.bf16 %v3176_v0, %v3173_v6 }
 0x72f   : > { %2441 = vmatmul.msk.bf16.vlgmr.msrb.gmra.mxu0 %vm785_vm0, %v1798_v11 }
 0x7ac   : > { %v1831_v3 = vpop.f32.mrf.mxu0 }
 0x7ad   : > { %v3184_v4 = vadd.f32 %v2573_v2, %v1831_v3 }
 0x7af   : > { %v3187_v5 = vmul.f32 0.70710677, %v3184_v4 }
 0x7b1   : > { %v1844_v31 = vand.u32 2147483647, %v3187_v5  ;;  %vm1840_vm15 = vcmp.ge.f32.partialorder %v3187_v5, 0.0 }
 0x7b3   : > { %v1846_v8 = vmul.f32 0.3275911, %v1844_v31  ;;  %v1898_v35 = vsub.f32 0.0, %v1844_v31 }
 0x7b4   : > { %v1833_v40 = vpop.f32.mrf.mxu0 }
 0x7b5   : > { %v1848_v33 = vadd.f32 1.0, %v1846_v8  ;;  %v3190_v10 = vadd.f32 %v2573_v2, %v1833_v40  ;;  %v1900_v41 = vmul.f32 %v1898_v35, %v1844_v31 }
 0x7b7   : > { %2628 = vrcp.f32 %v1848_v33  ;;  %v3193_v7 = vmul.f32 0.70710677, %v3190_v10  ;;  %v1861_v18 = vand.u32 2147483648, %v1848_v33  ;;  %v1859_v23 = vand.u32 2147483647, %v1848_v33 }
 0x7b8   : > { %vm1855_vm11 = vweird.f32 %v1848_v33  ;;  %v1902_v45 = vmul.f32 1.442695, %v1900_v41 }
 0x7b9   : > { %v1845_v12 = vand.u32 2147483647, %v3193_v7  ;;  %v1862_v27 = vor.u32 1.1754944e-38, %v1861_v18  ;;  %vm1860_vm8 = vcmp.eq.f32.partialorder %v1859_v23, 8.507059e+37  ;;  %vm1841_vm2 = vcmp.ge.f32.partialorder %v3193_v7, 0.0 }
 0x7ba   : > { %v1836_v18 = vmul.f32 0.5, %v3184_v4 }
 0x7bb   : > { %v1847_v9 = vmul.f32 0.3275911, %v1845_v12  ;;  %v1899_v48 = vsub.f32 0.0, %v1845_v12 }
 0x7bd   : > { %v2629_v13 = vpop.eup %2628  ;;  %v1849_v15 = vadd.f32 1.0, %v1847_v9  ;;  %v1901_v54 = vmul.f32 %v1899_v48, %v1845_v12 }
 0x7be   : > { %v1851_v14 = vmul.f32 %v2629_v13, %v1848_v33  ;;  %vm1856_vm1 = vweird.f32 %v2629_v13  ;;  %v2759_v33 = vmov -1.0  }
 0x7bf   : > { %2630 = vrcp.f32 %v1849_v15  ;;  %vm1857_vm7 = vmor %vm1855_vm11, %vm1856_vm1  ;;  %v1876_v1 = vand.u32 2147483648, %v1849_v15  ;;  %v1874_v39 = vand.u32 2147483647, %v1849_v15  ;;  %vm1870_vm10 = vweird.f32 %v1849_v15 }
 0x7c0   : > { %v1852_v46 = vsub.f32 1.0, %v1851_v14  ;;  %2632 = vpow2.f32 %v1902_v45  ;;  %v1904_v61 = vmul.f32 1.442695, %v1901_v54  ;;  %v1842_v9 = vsel %vm1840_vm15, 1.0, %v2759_v33 }
 0x7c1   : > { %v1877_v17 = vor.u32 1.1754944e-38, %v1876_v1  ;;  %vm1875_vm14 = vcmp.eq.f32.partialorder %v1874_v39, 8.507059e+37 }
 0x7c2   : > { %v1853_v22 = vmul.f32 %v2629_v13, %v1852_v46  ;;  %2634 = vpow2.f32 %v1904_v61 }
 0x7c4   : > { %v1854_v26 = vadd.f32 %v2629_v13, %v1853_v22  ;;  %v1837_v22 = vmul.f32 0.5, %v3190_v10 }
 0x7c5   : > { %v2631_v28 = vpop.eup %2630 }
 0x7c6   : > { %v1858_v58 = vsel %vm1857_vm7, %v2629_v13, %v1854_v26  ;;  %v1866_v30 = vmul.f32 %v2631_v28, %v1849_v15  ;;  %vm1871_vm9 = vweird.f32 %v2631_v28  ;;  %v2633_v63 = vpop.eup %2632  ;;  %v1843_v15 = vsel %vm1841_vm2, 1.0, %v2759_v33 }
 0x7c7   : > { %v1863_v29 = vsel %vm1860_vm8, %v1862_v27, %v1858_v58  ;;  %vm1872_vm13 = vmor %vm1870_vm10, %vm1871_vm9  ;;  %v1925_v27 = vperm.slane %v3158_v55, 3 }
 0x7c8   : > { %v1880_v34 = vmul.f32 1.0614054, %v1863_v29  ;;  %v1867_v36 = vsub.f32 1.0, %v1866_v30  ;;  %v2635_v40 = vpop.eup %2634 }
 0x7ca   : > { %v1882_v37 = vadd.f32 -1.4531521, %v1880_v34  ;;  %v1868_v38 = vmul.f32 %v2631_v28, %v1867_v36 }
 0x7cc   : > { %v1884_v21 = vmul.f32 %v1882_v37, %v1863_v29  ;;  %v1869_v56 = vadd.f32 %v2631_v28, %v1868_v38 }
 0x7ce   : > { %v1886_v42 = vadd.f32 1.4214138, %v1884_v21  ;;  %v1873_v43 = vsel %vm1872_vm13, %v2631_v28, %v1869_v56 }
 0x7cf   : > { %v1878_v47 = vsel %vm1875_vm14, %v1877_v17, %v1873_v43  ;;  %v2501_v17 = vld [vmem:[%s3333_s16] sm:$0xff] }
 0x7d0   : > { %v1888_v44 = vmul.f32 %v1886_v42, %v1863_v29  ;;  %v1881_v49 = vmul.f32 1.0614054, %v1878_v47  ;;  %v2502_v42 = vld [vmem:[%s3333_s16 + $0x8] sm:$0xff] }
 0x7d1   : > { %2107 = vmatpush.bf16.msrb.mxu2 %v2502_v42 }
 0x7d2   : > { %v1890_v50 = vadd.f32 -0.28449672, %v1888_v44  ;;  %v1883_v52 = vadd.f32 -1.4531521, %v1881_v49 }
 0x7d4   : > { %v1892_v53 = vmul.f32 %v1890_v50, %v1863_v29  ;;  %v1885_v25 = vmul.f32 %v1883_v52, %v1878_v47  ;;  %v1968_v52 = vld [vmem:[%s749_s23] sm:$0x1] }
 0x7d5   : > { %2108 = vmatpush.bf16.msrb.mxu2 %v2501_v17 }
 0x7d6   : > { %v1894_v19 = vadd.f32 0.2548296, %v1892_v53  ;;  %v1887_v59 = vadd.f32 1.4214138, %v1885_v25 }
 0x7d8   : > { %v1896_v60 = vmul.f32 %v1894_v19, %v1863_v29  ;;  %v1889_v62 = vmul.f32 %v1887_v59, %v1878_v47  ;;  %v2022_v59 = vadd.f32 1.0, %v1968_v52  ;;  %v2085_v52 = vperm.slane %v3158_v55, 6 }
 0x7da   : > { %v1906_v51 = vmul.f32 %v2633_v63, %v1896_v60  ;;  %v1891_v11 = vadd.f32 -0.28449672, %v1889_v62  ;;  %v2019_v62 = vperm.slane %v3158_v55, 5 }
 0x7dc   : > { %v1893_v2 = vmul.f32 %v1891_v11, %v1878_v47  ;;  %v1908_v3 = vsub.f32 1.0, %v1906_v51  ;;  %v2026_v11 = vperm.slane %v2022_v59, 0 }
 0x7de   : > { %v1895_v31 = vadd.f32 0.2548296, %v1893_v2  ;;  %v1910_v12 = vmul.f32 %v1908_v3, %v1842_v9  ;;  %v1969_v3 = vld [vmem:[%s749_s23 + $0x1] sm:$0x1]  ;;  %s2173_s23 = scalar_lea.hbm %s3335_s18, %s2505_s26 }
 0x7df   : > { %s2176_s29 = sshll.u32 %s2173_s23, 4  ;;  %s2177_s29 = int_to_ptr.hbm [resolvable:$true] %s2176_s29 }
 0x7e0   : > { %v1897_v8 = vmul.f32 %v1895_v31, %v1878_v47  ;;  %v1912_v16 = vadd.f32 1.0, %v1910_v12  ;;  %v2023_v12 = vadd.f32 1.0, %v1969_v3  ;;  %s2662_s28 = sshra.s32 %s2177_s29, 4  ;;  %s2663_s28 = int_to_ptr.hbm [resolvable:$true] %s2662_s28 }
 0x7e1   : > { %s2664_s0 = scalar_lea.hbm %s2663_s28, 16  ;;  %p2669_p0 = scmp.lt.s32.totalorder %s2663_s28, %s3335_s18 }
 0x7e2   : > { %v1907_v13 = vmul.f32 %v2635_v40, %v1897_v8  ;;  %v1914_v5 = vmul.f32 %v1912_v16, %v1836_v18  ;;  %v2574_v40 = vld [vmem:[%s3223_s20] ss:$0 sm:$0xff]  ;;  %v2027_v16 = vperm.slane %v2023_v12, 0  ;;  %p2665_p11 = scmp.ne.s32.totalorder %s2663_s28, %s2664_s0 }
 0x7e4   : > { %v1909_v14 = vsub.f32 1.0, %v1907_v13  ;;  %p2666_p12 = pnand %p2665_p11, %p2899_p5 }
 0x7e6   : > { %v1911_v46 = vmul.f32 %v1909_v14, %v1843_v15  ;;  %p2667_p13 = pneg %p2666_p12 }
 0x7e8   : > { %v1913_v23 = vadd.f32 1.0, %v1911_v46 }
 0x7ea   : > { %v1915_v24 = vmul.f32 %v1913_v23, %v1837_v22  ;;  %v2575_v23 = vld [vmem:[%s3223_s20 + $0x1] ss:$0 sm:$0xff]  ;;  %s3249_s20 = sand.u32 1, %s2734_s30  }
 0x7eb   : > { %s3344_s21 = sshll.u32 %s3249_s20, 4  ;;  %s2157_s27 = scalar_lea.sflag [#allocation3], %s3249_s20 }
 0x7ec   : > { %v1916_v26 = vpack.c.bf16 %v1915_v24, %v1914_v5  ;;  %s704_s2 = scalar_lea.vmem [#allocation2], %s3344_s21 }
 0x7ed   : > { %s2174_s25 = sshll.u32 %s704_s2, 4  ;;  %s2175_s25 = int_to_ptr.vmem [resolvable:$true] %s2174_s25 }
 0x7ee   : > { %2458 = vmatmul.msk.bf16.vlgmr.msrb.gmra.mxu1 %vm1950_vm3, %v1916_v26 }
 0x86b   : > { %v1963_v28 = vpop.f32.mrf.mxu1 }
 0x86c   : > { %v1964_v58 = vadd.f32 %v1963_v28, %v1925_v27 }
 0x86e   : > { %v1972_v7 = vsel %vm785_vm0, %v1964_v58, 0.0 }
 0x86f   : > { %1973 = vadd.xlane.f32.xlu1 %v1972_v7 }
 0x873   : > { %v1965_v29 = vpop.f32.mrf.mxu1 }
 0x874   : > { %v1966_v30 = vadd.f32 %v1965_v29, %v1925_v27 }
 0x876   : > { %v1975_v4 = vsel %vm785_vm0, %v1966_v30, 0.0 }
 0x877   : > { %1976 = vadd.xlane.f32.xlu2 %v1975_v4 }
 0x8e2   : > { %v1974_v10 = vpop.xlane.xlu1 %1973 }
 0x8e3   : > { %v1978_v32 = vmul.f32 %v1974_v10, %v2940_v20 }
 0x8e5   : > { %v1980_v34 = vsub.f32 %v1964_v58, %v1978_v32 }
 0x8e7   : > { %v1982_v35 = vmul.f32 %v1980_v34, %v1980_v34 }
 0x8e9   : > { %v1984_v36 = vsel %vm785_vm0, %v1982_v35, 0.0 }
 0x8ea   : > { %v1977_v37 = vpop.xlane.xlu2 %1976  ;;  %1985 = vadd.xlane.f32.xlu0 %v1984_v36 }
 0x8eb   : > { %v1979_v1 = vmul.f32 %v1977_v37, %v2940_v20 }
 0x8ed   : > { %v1981_v38 = vsub.f32 %v1966_v30, %v1979_v1 }
 0x8ef   : > { %v1983_v39 = vmul.f32 %v1981_v38, %v1981_v38 }
 0x8f1   : > { %v1987_v57 = vsel %vm785_vm0, %v1983_v39, 0.0 }
 0x8f2   : > { %1988 = vadd.xlane.f32.xlu1 %v1987_v57 }
 0x95d   : > { %v1986_v21 = vpop.xlane.xlu0 %1985 }
 0x95e   : > { %v1990_v41 = vmul.f32 %v1986_v21, %v2940_v20 }
 0x960   : > { %v1992_v56 = vadd.f32 1e-05, %v1990_v41 }
 0x962   : > { %2636 = vrsqrt.f32 %v1992_v56  ;;  %vm2000_vm5 = vweird.f32 %v1992_v56 }
 0x965   : > { %v1989_v43 = vpop.xlane.xlu1 %1988 }
 0x966   : > { %v1991_v44 = vmul.f32 %v1989_v43, %v2940_v20  ;;  %v2016_v20 = vperm.slane %v3158_v55, 4 }
 0x968   : > { %v2637_v45 = vpop.eup %2636  ;;  %v1993_v47 = vadd.f32 1e-05, %v1991_v44 }
 0x969   : > { %v1995_v48 = vmul.f32 %v2637_v45, %v1992_v56  ;;  %vm2001_vm4 = vweird.f32 %v2637_v45 }
 0x96a   : > { %2638 = vrsqrt.f32 %v1993_v47  ;;  %vm2002_vm6 = vmor %vm2000_vm5, %vm2001_vm4  ;;  %vm2010_vm1 = vweird.f32 %v1993_v47 }
 0x96b   : > { %v1996_v49 = vmul.f32 %v2637_v45, %v1995_v48 }
 0x96d   : > { %v1997_v50 = vmul.f32 0.5, %v1996_v49  ;;  %v2504_v49 = vld [vmem:[%s3334_s17 + $0x8] sm:$0xff] }
 0x96e   : > { %2146 = vmatpush.bf16.msrb.mxu3 %v2504_v49 }
 0x96f   : > { %v1998_v53 = vsub.f32 1.5, %v1997_v50  ;;  %v2503_v50 = vld [vmem:[%s3334_s17] sm:$0xff] }
 0x970   : > { %v2639_v54 = vpop.eup %2638 }
 0x971   : > { %v1999_v25 = vmul.f32 %v2637_v45, %v1998_v53  ;;  %v2005_v19 = vmul.f32 %v2639_v54, %v1993_v47  ;;  %vm2011_vm12 = vweird.f32 %v2639_v54 }
 0x972   : > { %vm2012_vm11 = vmor %vm2010_vm1, %vm2011_vm12  ;;  %2147 = vmatpush.bf16.msrb.mxu3 %v2503_v50 }
 0x973   : > { %v2003_v60 = vsel %vm2002_vm6, %v2637_v45, %v1999_v25  ;;  %v2006_v61 = vmul.f32 %v2639_v54, %v2005_v19 }
 0x974   : > { %v2014_v63 = vmul.f32 %v2003_v60, %v1980_v34 }
 0x975   : > { %v2007_v51 = vmul.f32 0.5, %v2006_v61 }
 0x976   : > { %v2017_v2 = vmul.f32 %v2016_v20, %v2014_v63 }
 0x977   : > { %v2008_v31 = vsub.f32 1.5, %v2007_v51 }
 0x978   : > { %v2020_v8 = vadd.f32 %v2019_v62, %v2017_v2 }
 0x979   : > { %v2009_v33 = vmul.f32 %v2639_v54, %v2008_v31 }
 0x97a   : > { %v2030_v9 = vmul.f32 %v2026_v11, %v2020_v8 }
 0x97b   : > { %v2013_v13 = vsel %vm2012_vm11, %v2639_v54, %v2009_v33 }
 0x97c   : > { %v2015_v14 = vmul.f32 %v2013_v13, %v1981_v38  ;;  %v2038_v15 = vadd.f32 %v2574_v40, %v2030_v9 }
 0x97e   : > { %v2018_v46 = vmul.f32 %v2016_v20, %v2015_v14  ;;  %v2459_v18 = vmul.f32 -1.442695, %v2038_v15 }
 0x980   : > { %v2021_v22 = vadd.f32 %v2019_v62, %v2018_v46  ;;  %2640 = vpow2.f32 %v2459_v18 }
 0x982   : > { %v2031_v5 = vmul.f32 %v2027_v16, %v2021_v22 }
 0x984   : > { %v2039_v24 = vadd.f32 %v2575_v23, %v2031_v5 }
 0x986   : > { %v2641_v26 = vpop.eup %2640  ;;  %v2460_v27 = vmul.f32 -1.442695, %v2039_v24 }
 0x987   : > { %v2046_v28 = vadd.f32 1.0, %v2641_v26 }
 0x988   : > { %2642 = vpow2.f32 %v2460_v27 }
 0x989   : > { %2644 = vrcp.f32 %v2046_v28  ;;  %v2059_v36 = vand.u32 2147483648, %v2046_v28  ;;  %vm2053_vm8 = vweird.f32 %v2046_v28  ;;  %v2057_v37 = vand.u32 2147483647, %v2046_v28 }
 0x98b   : > { %v2060_v41 = vor.u32 1.1754944e-38, %v2059_v36  ;;  %vm2058_vm13 = vcmp.eq.f32.partialorder %v2057_v37, 8.507059e+37 }
 0x98e   : > { %v2643_v58 = vpop.eup %2642 }
 0x98f   : > { %v2645_v7 = vpop.eup %2644  ;;  %v2047_v29 = vadd.f32 1.0, %v2643_v58 }
 0x990   : > { %v2049_v30 = vmul.f32 %v2645_v7, %v2046_v28  ;;  %vm2054_vm7 = vweird.f32 %v2645_v7 }
 0x991   : > { %2646 = vrcp.f32 %v2047_v29  ;;  %vm2055_vm9 = vmor %vm2053_vm8, %vm2054_vm7  ;;  %v2074_v38 = vand.u32 2147483648, %v2047_v29  ;;  %v2072_v21 = vand.u32 2147483647, %v2047_v29  ;;  %vm2068_vm14 = vweird.f32 %v2047_v29 }
 0x992   : > { %v2050_v4 = vsub.f32 1.0, %v2049_v30 }
 0x993   : > { %v2075_v17 = vor.u32 1.1754944e-38, %v2074_v38  ;;  %vm2073_vm2 = vcmp.eq.f32.partialorder %v2072_v21, 8.507059e+37 }
 0x994   : > { %v2051_v10 = vmul.f32 %v2645_v7, %v2050_v4 }
 0x996   : > { %v2052_v34 = vadd.f32 %v2645_v7, %v2051_v10 }
 0x997   : > { %v2647_v32 = vpop.eup %2646 }
 0x998   : > { %v2064_v35 = vmul.f32 %v2647_v32, %v2047_v29  ;;  %v2056_v39 = vsel %vm2055_vm9, %v2645_v7, %v2052_v34  ;;  %vm2069_vm10 = vweird.f32 %v2647_v32 }
 0x999   : > { %v2061_v42 = vsel %vm2058_vm13, %v2060_v41, %v2056_v39  ;;  %vm2070_vm15 = vmor %vm2068_vm14, %vm2069_vm10 }
 0x99a   : > { %v2065_v1 = vsub.f32 1.0, %v2064_v35  ;;  %v2078_v45 = vmul.f32 %v2061_v42, %v2038_v15 }
 0x99c   : > { %v2066_v57 = vmul.f32 %v2647_v32, %v2065_v1 }
 0x99e   : > { %v2067_v56 = vadd.f32 %v2647_v32, %v2066_v57 }
 0x9a0   : > { %v2071_v43 = vsel %vm2070_vm15, %v2647_v32, %v2067_v56 }
 0x9a1   : > { %v2076_v44 = vsel %vm2073_vm2, %v2075_v17, %v2071_v43 }
 0x9a2   : > { %v2079_v47 = vmul.f32 %v2076_v44, %v2039_v24 }
 0x9a4   : > { %v2080_v48 = vpack.c.bf16 %v2079_v47, %v2078_v45 }
 0x9a6   : > { %2469 = vmatmul.msk.bf16.vlgmr.msrb.gmra.mxu2 %vm785_vm0, %v2080_v48 }
 0xa29   : > { %v2110_v53 = vpop.f32.mrf.mxu2 }
 0xa2a   : > { %v2111_v54 = vadd.f32 %v2110_v53, %v2085_v52 }
 0xa2c   : > { %v2115_v25 = vadd.f32 %v2111_v54, %v3173_v6 }
 0xa2e   : > { %2117 = vst.msk [vmem:[%s704_s2] sm:$0xff] %vm785_vm0, %v2115_v25 }
 0xa31   : > { %v2112_v19 = vpop.f32.mrf.mxu2 }
 0xa32   : > { %v2113_v20 = vadd.f32 %v2112_v19, %v2085_v52 }
 0xa34   : > { %v2116_v59 = vadd.f32 %v2113_v20, %v3176_v0 }
 0xa36   : > { %2118 = vst.msk [vmem:[%s704_s2 + $0x8] sm:$0xff] %vm785_vm0, %v2116_v59  ;;  %v2119_v60 = vpack.c.bf16 %v2116_v59, %v2115_v25  ;;  %s2668_s2 = scalar_lea.hbm %s3335_s18, 32 }
 0xa37   : > { %p2670_p1 = scmp.lt.s32.totalorder %s2668_s2, %s2664_s0 }
 0xa38   : > { %2478 = vmatmul.msk.bf16.vlgmr.msrb.gmra.mxu3 %vm785_vm0, %v2119_v60 }
 0xa39   : > { %p2671_p2 = por %p2670_p1, %p2669_p0 }
 0xa3b   : > { %p2672_p3 = pnand %p2671_p2, %p2667_p13 }
 0xa3d   : > { %2675 = shalt.err (!%p2672_p3)
}
 0xa3e   : > { %s3347_s24 = smov 128   ;;  %s3371_s22 = smov 8   ;;  %v2124_v6 = vperm.slane %v3158_v55, 7 }
 0xa3f   : > { %2507 = dma.vmem_to_hbm [thread:$0]  (%p2899_p5), %s2175_s25, 256, %s2177_s29, %s2157_s27, %s3347_s24, %s3347_s24, %s3371_s22  }
 0xa40   : > { %s3372_s19 = sshll.u32 %s3249_s20, 4  ;;  %s3373_s28 = sld [smem:[#allocation20_spill]] }
 0xa41   : > { %s711_s4 = scalar_lea.vmem [#allocation4], %s3372_s19  ;;  %s2162_s25 = scalar_lea.sflag [#allocation5], %s3249_s20 }
 0xa42   : > { %s2191_s2 = sshll.u32 %s711_s4, 4  ;;  %s2192_s2 = int_to_ptr.vmem [resolvable:$true] %s2191_s2 }
 0xa46   : > { %s2190_s0 = scalar_lea.hbm %s3373_s28, %s2505_s26  ;;  %s2696_s26 = scalar_lea.hbm %s3373_s28, 32 }
 0xa47   : > { %s2193_s1 = sshll.u32 %s2190_s0, 4  ;;  %s2194_s1 = int_to_ptr.hbm [resolvable:$true] %s2193_s1 }
 0xa48   : > { %s2690_s29 = sshra.s32 %s2194_s1, 4  ;;  %s2691_s29 = int_to_ptr.hbm [resolvable:$true] %s2690_s29 }
 0xa49   : > { %s2692_s27 = scalar_lea.hbm %s2691_s29, 16  ;;  %p2697_p9 = scmp.lt.s32.totalorder %s2691_s29, %s3373_s28 }
 0xa4a   : > { %p2693_p4 = scmp.ne.s32.totalorder %s2691_s29, %s2692_s27  ;;  %p2698_p10 = scmp.lt.s32.totalorder %s2696_s26, %s2692_s27 }
 0xa4c   : > { %p2694_p7 = pnand %p2693_p4, %p2899_p5  ;;  %p2699_p11 = por %p2698_p10, %p2697_p9 }
 0xa4e   : > { %p2695_p8 = pneg %p2694_p7 }
 0xa50   : > { %p2700_p12 = pnand %p2699_p11, %p2695_p8 }
 0xabb   : > { %v2149_v0 = vpop.f32.mrf.mxu3 }
 0xabc   : > { %v2150_v61 = vadd.f32 %v2149_v0, %v2124_v6 }
 0xabe   : > { %2154 = vst.msk [vmem:[%s711_s4] sm:$0xff] %vm785_vm0, %v2150_v61 }
 0xac3   : > { %v2151_v62 = vpop.f32.mrf.mxu3 }
 0xac4   : > { %v2152_v63 = vadd.f32 %v2151_v62, %v2124_v6 }
 0xac6   : > { %2155 = vst.msk [vmem:[%s711_s4 + $0x8] sm:$0xff] %vm785_vm0, %v2152_v63 }
 0xac7   : > { %2703 = shalt.err (!%p2700_p12)
}
 0xac8   : > { %s3374_s20 = smov 128  }
 0xac9   : > { %2508 = dma.vmem_to_hbm [thread:$0]  (%p2899_p5), %s2192_s2, 256, %s2194_s1, %s2162_s25, %s3374_s20, %s3374_s20, %s3371_s22  }
 0xaca PF: > { %s3375_s4 = sld [smem:[#allocation10_spill]] }
 0xacb   : > { %s3376_s0 = sld [smem:[#allocation8_spill]] }
 0xad0   : > { %p2518_p13 = scmp.ge.s32.totalorder %s3375_s4, 2 }
 0xad1   : > { %s2208_s24 = sand.u32 1, %s3376_s0  }
 0xad2   : > { %p2512_p0 = pnand %p2518_p13, %p2903_p6  ;;  %s2209_s29 = scalar_lea.sflag [#allocation3], %s2208_s24 }
 0xad4   : > { %p2513_p1 = pneg %p2512_p0 }
 0xad6   : > { %2721 = dma.done.wait (%p2513_p1), %s2209_s29, 256  }
 0xad7   : > { %2723 = vsyncadd (%p2513_p1), %s2209_s29, 4294967040  ;;  %s2219_s27 = scalar_lea.sflag [#allocation5], %s2208_s24 }
 0xad8   : > { %2725 = dma.done.wait (%p2513_p1), %s2219_s27, 256  }
 0xad9   : > { %2727 = vsyncadd (%p2513_p1), %s2219_s27, 4294967040  ;;  %s3378_s21 = sld [smem:[#allocation11_spill]]  ;;  %s3381_s0 = smov %s2734_s30 }
 0xada   : > { %s3379_s3 = sld [smem:[#allocation9_spill]] }
 0xadb   : > { %s3380_s20 = sld [smem:[#allocation12_spill]] }
 0xadf   : > { %p33_p5 = scmp.ge.s32.totalorder %s3378_s21, 4  }
 0xae0   : > { %s3382_s30 = smov %s3379_s3 }
 0xae1   :  { %35 = sbr.rel (!%p33_p5) target bundleno = 13 (0xd), region = 168 }
 0xae6   :  { %2225 = vsyncpa [#allocation3], 1 }
 0xae7   :  { %2227 = vsyncpa [#allocation3 + $0x1], 1 }
 0xae8   :  { %2228 = vsyncpa [#allocation5], 1 }
 0xae9   :  { %2230 = vsyncpa [#allocation5 + $0x1], 1 }

</bundles_post_ra>
